<compile_context>
chip_gen: v7x
topology: tpu7x:2x2x1
jax: 0.10.0
libtpu: 0.0.40
codegen_flags: <defaults>
</compile_context>

<pallas_src>
import functools

import jax
import jax.numpy as jnp
from jax import lax
from jax.experimental import pallas as pl
from jax.experimental.pallas import tpu as pltpu


def _round_up(x, m):
    return ((x + m - 1) // m) * m


def _device_kind():
    try:
        return jax.devices()[0].device_kind.lower()
    except Exception:
        return ""


def _chip_profile():
    """Per-generation knobs (heuristic on device_kind; conservative fallback)."""
    kind = _device_kind()
    is_v7 = ("v7" in kind) or ("7x" in kind)
    is_v6 = "v6" in kind
    is_v5 = "v5" in kind
    big_vmem = (is_v5 or is_v6) and not is_v7           # 128 MiB VMEM parts
    return {
        "bf16_compute": bool(is_v6 or is_v7),           # bf16 VPU/EUP available
        "enc_budget": (32 << 20) if big_vmem else (12 << 20),
        "vmem_cap": (100 << 20) if big_vmem else (44 << 20),
    }


def _make_plan(B, T, H, itemsize):
    prof = _chip_profile()

    # B blocking: two "parallel" blocks whenever the padded batch reaches 16 rows
    # (keeps v7x's second TensorCore busy; harmless padding on single-TC chips).
    if _round_up(B, 8) >= 16:
        bb = _round_up((B + 1) // 2, 8)
    else:
        bb = B                                           # block == full dim, always legal
    B_pad = _round_up(B, bb)

    # T tiling: biggest 128-multiple tile whose double-buffered enc slab (per B
    # block, not full B) fits the per-generation budget.
    tt = 2048 if prof["enc_budget"] >= (32 << 20) else 512
    while tt > 128 and 2 * bb * tt * H * itemsize > prof["enc_budget"]:
        tt //= 2
    tt = min(tt, _round_up(T, 128))
    T_pad = _round_up(T, tt)

    compute_dtype = jnp.bfloat16 if prof["bf16_compute"] else jnp.float32

    vmem_est = (2 * bb * tt * H * itemsize               # enc double buffer
                + 2 * bb * tt * 4                        # mask double buffer
                + 2 * bb * T_pad * 4                     # resident output block
                + bb * H * 4 + 2 * H * 4                 # rec + w_s residents
                + (2 << 20))                             # headroom
    vmem_limit = int(min(max(2 * vmem_est, 16 << 20), prof["vmem_cap"]))

    return {"bb": bb, "tt": tt, "B_pad": B_pad, "T_pad": T_pad,
            "compute_dtype": compute_dtype, "vmem_limit": vmem_limit}


# ------------------------------------ kernel ------------------------------------

def _attention_kernel(enc_ref, mask_ref, rec_ref, ws_ref, bs_ref, out_ref,
                      *, tt, compute_dtype, h_chunk):
    t = pl.program_id(1)
    nt = pl.num_programs(1)
    bb, _, H = enc_ref.shape
    cdt = compute_dtype

    # scores tile: sum_H(tanh(enc + rec) * w_s) + b_s + mask       [VPU/EUP/XLU]
    if h_chunk >= H:
        hidden = enc_ref[...].astype(cdt) + rec_ref[...].astype(cdt)[:, None, :]
        th = jnp.tanh(hidden).astype(jnp.float32)                   # (bb, tt, H)
        ws = ws_ref[...].astype(jnp.float32)                        # (1, H)
        s = jnp.sum(th * ws[None, :, :], axis=-1)                   # (bb, tt)
    else:
        # Large H: accumulate over 128-lane chunks to bound vreg live ranges.
        def h_body(c, acc):
            h0 = pl.multiple_of(c * h_chunk, h_chunk)
            e = enc_ref[:, :, pl.ds(h0, h_chunk)].astype(cdt)
            r = rec_ref[:, pl.ds(h0, h_chunk)].astype(cdt)[:, None, :]
            th = jnp.tanh(e + r).astype(jnp.float32)
            wsc = ws_ref[:, pl.ds(h0, h_chunk)].astype(jnp.float32)
            return acc + jnp.sum(th * wsc[None, :, :], axis=-1)
        s = lax.fori_loop(0, H // h_chunk, h_body,
                          jnp.zeros((bb, tt), jnp.float32), unroll=True)

    s = s + bs_ref[0] + mask_ref[...].astype(jnp.float32)

    # out_ref's index_map ignores t -> it is resident across the whole T axis;
    # write the score tile straight into it (lane-dense, 128-aligned stores).
    off = pl.multiple_of(t * tt, 128)
    out_ref[:, pl.ds(off, tt)] = s

    # Final T step: softmax in place over the full resident score row (lane axis = T).
    @pl.when(t == nt - 1)
    def _():
        sc = out_ref[...]                                           # (bb, T_pad) f32
        m = jnp.max(sc, axis=1, keepdims=True)
        e = jnp.exp(sc - m)
        denom = jnp.sum(e, axis=1, keepdims=True)
        r = pl.reciprocal(denom, approx=True)
        r = r * (2.0 - denom * r)       # one Newton step -> ~f32-exact reciprocal
        out_ref[...] = (e * r).astype(out_ref.dtype)


# ------------------------------------ wrapper ------------------------------------

def attention_forward(att_state, rnn_state, prev_att_weights, params):
    """Pallas-backed Attention.forward (force_forward=None).

    att_state comes from init_attention (pre-padded, batch-major buffers).
    rnn_state: (B, R) decoder state.  Returns (att_state, att_weights (T, B)).
    """
    del prev_att_weights  # only consulted when force_forward is enabled
    # TODO(synk): recompute_forward_mask (force_forward path) is a per-batch
    # data-dependent python loop; not implemented here (force_forward=None).
    enc_p = att_state["enc"]                     # (B_pad, T_pad, H), bf16 by default
    mask_p = att_state["mask"]                   # (B_pad, T_pad) f32
    B, T = att_state["shape"]
    plan = att_state["plan"]
    bb, tt = plan["bb"], plan["tt"]
    B_pad, T_pad, H = enc_p.shape
    nb, nt = B_pad // bb, T_pad // tt
    itemsize = jnp.dtype(enc_p.dtype).itemsize

    # Tiny per-step matmul stays in XLA and feeds the kernel as a resident input.
    rec = (rnn_state.astype(jnp.float32)
           @ params["rec_state_to_hidden_w"].T.astype(jnp.float32))   # (B, H)
    rec_p = jnp.zeros((B_pad, H), jnp.float32).at[:B, :].set(rec)

    ws = params["hidden_to_score_w"].reshape(1, H).astype(jnp.float32)
    bs = params["hidden_to_score_b"].reshape(1).astype(jnp.float32)    # -> SMEM

    h_chunk = 128 if (H >= 1024 and H % 128 == 0) else H
    kernel = functools.partial(_attention_kernel, tt=tt,
                               compute_dtype=plan["compute_dtype"], h_chunk=h_chunk)

    cost = pl.CostEstimate(
        flops=int(3 * B_pad * T_pad * H + 6 * B_pad * T_pad),
        transcendentals=int(B_pad * T_pad * H + B_pad * T_pad),
        bytes_accessed=int(B_pad * T_pad * H * itemsize + 2 * B_pad * T_pad * 4
                           + B_pad * H * 4 + H * 4),
    )

    grid_spec = pltpu.PrefetchScalarGridSpec(
        num_scalar_prefetch=0,
        grid=(nb, nt),
        in_specs=[
            pl.BlockSpec((bb, tt, H), lambda b, t: (b, t, 0)),     # enc tile (streamed)
            pl.BlockSpec((bb, tt), lambda b, t: (b, t)),           # mask tile (streamed)
            pl.BlockSpec((bb, H), lambda b, t: (b, 0)),            # rec (resident)
            pl.BlockSpec((1, H), lambda b, t: (0, 0)),             # w_s (resident)
            pl.BlockSpec(memory_space=pltpu.MemorySpace.SMEM),     # b_s scalar
        ],
        out_specs=pl.BlockSpec((bb, T_pad), lambda b, t: (b, 0)),  # resident across t
    )

    out_bm = pl.pallas_call(
        kernel,
        out_shape=jax.ShapeDtypeStruct((B_pad, T_pad), jnp.float32),
        grid_spec=grid_spec,
        compiler_params=pltpu.CompilerParams(
            dimension_semantics=("parallel", "arbitrary"),
            vmem_limit_bytes=plan["vmem_limit"]),
        cost_estimate=cost,
    )(enc_p, mask_p, rec_p, ws, bs)

    att_weights = out_bm[:B, :T].T               # back to time-major (T, B)
    return att_state, att_weights


# ------------------------- plain-JAX glue (init_attention) -------------------------

def get_mask(lens, max_t):
    # (B, T): 1.0 where t < len[b], else 0.0 (batch-major internal layout)
    t_idx = jnp.arange(max_t)[None, :]
    return (t_idx < lens[:, None]).astype(jnp.float32)


def init_attention(encoded, encoded_lens, params, *, enc_dtype=jnp.bfloat16):
    """encoded: (T, B, E) time-major, as in the PyTorch module.

    att_state carries the pre-padded, batch-major enc contribution / mask so the
    per-step kernel streams them directly (no per-call padding copies in HBM).
    """
    T, B, _ = encoded.shape
    H = params["encoded_to_hidden_w"].shape[0]
    itemsize = jnp.dtype(enc_dtype).itemsize
    plan = _make_plan(B, T, H, itemsize)
    B_pad, T_pad = plan["B_pad"], plan["T_pad"]

    enc_contribution = (encoded.astype(jnp.float32)
                        @ params["encoded_to_hidden_w"].T.astype(jnp.float32)
                        + params["encoded_to_hidden_b"].astype(jnp.float32))  # (T,B,H)
    enc_bm = jnp.transpose(enc_contribution, (1, 0, 2)).astype(enc_dtype)     # (B,T,H)
    mask_bm = (get_mask(encoded_lens, T) - 1.0) * 100000.0                    # (B,T)

    # Pad once, here.  Padded T columns / padded B rows are hard-masked (-1e5).
    enc_p = jnp.zeros((B_pad, T_pad, H), enc_dtype).at[:B, :T, :].set(enc_bm)
    mask_p = jnp.full((B_pad, T_pad), -100000.0, jnp.float32).at[:B, :T].set(mask_bm)

    att_weights = jnp.zeros((T, B), jnp.float32).at[0, :].set(1.0)
    att_state = {"enc": enc_p, "mask": mask_p, "shape": (B, T), "plan": plan}
    return att_state, att_weights


# ------------------------------------ driver ------------------------------------

def make_params(key, encoded_size, rec_state_size, hidden_size, *, zero_score_weight=True):
    k1, k2, k3, k4, k5 = jax.random.split(key, 5)
    # The PyTorch module zero-inits hidden_to_score.weight; allow a nonzero init so
    # the tanh/score path is actually exercised numerically in the test below.
    score_w = (jnp.zeros((1, hidden_size), jnp.float32) if zero_score_weight
               else jax.random.normal(k5, (1, hidden_size), jnp.float32) * 0.1)
    return {
        "encoded_to_hidden_w": jax.random.normal(k1, (hidden_size, encoded_size),
                                                 jnp.float32) * 0.1,
        "encoded_to_hidden_b": jax.random.normal(k2, (hidden_size,), jnp.float32) * 0.1,
        "rec_state_to_hidden_w": jax.random.normal(k3, (hidden_size, rec_state_size),
                                                   jnp.float32) * 0.1,
        "hidden_to_score_w": score_w,
        "hidden_to_score_b": jax.random.normal(k4, (1,), jnp.float32) * 0.1,
    }


def reference_forward(att_state, rnn_state, params):
    B, T = att_state["shape"]
    enc = att_state["enc"][:B, :T, :].astype(jnp.float32)                 # (B,T,H)
    mask = att_state["mask"][:B, :T]                                      # (B,T)
    rec = (rnn_state.astype(jnp.float32)
           @ params["rec_state_to_hidden_w"].T.astype(jnp.float32))       # (B,H)
    hidden = enc + rec[:, None, :]
    scores = jnp.einsum("bth,h->bt", jnp.tanh(hidden),
                        params["hidden_to_score_w"][0].astype(jnp.float32))
    scores = scores + params["hidden_to_score_b"][0] + mask
    return jax.nn.softmax(scores, axis=1).T                               # (T, B)


if __name__ == "__main__":
    T, B = 16, 4
    encoded_size, rec_state_size, hidden_size = 8, 8, 32

    key = jax.random.PRNGKey(0)
    kp, ke, kr = jax.random.split(key, 3)
    params = make_params(kp, encoded_size, rec_state_size, hidden_size,
                         zero_score_weight=False)

    encoded = jax.random.normal(ke, (T, B, encoded_size), jnp.float32)
    encoded_lens = jnp.array([16, 12, 9, 5], dtype=jnp.int32)
    rnn_state = jax.random.normal(kr, (B, rec_state_size), jnp.float32)

    att_state, prev_att_weights = init_attention(encoded, encoded_lens, params)
    (_, att_weights) = attention_forward(att_state, rnn_state, prev_att_weights, params)
    att_weights = jax.block_until_ready(att_weights)

    ref = reference_forward(att_state, rnn_state, params)
    bf16_compute = att_state["plan"]["compute_dtype"] == jnp.bfloat16
    tol = 5e-3 if bf16_compute else 1e-4                  # bf16 tanh/add on v6e/v7x
    assert att_weights.shape == (T, B)
    assert jnp.allclose(att_weights, ref, atol=tol, rtol=tol), (
        float(jnp.max(jnp.abs(att_weights - ref))))
    # columns sum to 1, masked-out positions get ~0 probability
    assert jnp.allclose(att_weights.sum(axis=0), 1.0, atol=1e-4)
    assert float(att_weights[10:, 3].sum()) < 1e-6

    print("KERNEL_OK")
</pallas_src>

<mosaic_0001>
module attributes {stable_mosaic.version = 11 : i64} {
  func.func @_attention_kernel(%arg0: i32, %arg1: i32, %arg2: memref<4x128x32xbf16, #tpu.memory_space<vmem>>, %arg3: memref<4x128xf32, #tpu.memory_space<vmem>>, %arg4: memref<4x32xf32, #tpu.memory_space<vmem>>, %arg5: memref<1x32xf32, #tpu.memory_space<vmem>>, %arg6: memref<1xf32, #tpu.memory_space<smem>>, %arg7: memref<4x128xf32, #tpu.memory_space<vmem>>) attributes {dimension_semantics = [#tpu.dimension_semantics<parallel>, #tpu.dimension_semantics<arbitrary>], iteration_bounds = array<i64: 1, 1>, scalar_prefetch = 0 : i64, scratch_operands = 0 : i64, tpu.core_type = #tpu.core_type<tc>, window_params = [{transform_indices = @transform_0, window_bounds = array<i64: 4, 128, 32>}, {transform_indices = @transform_1, window_bounds = array<i64: 4, 128>}, {transform_indices = @transform_2, window_bounds = array<i64: 4, 32>}, {pipeline_mode = #tpu.pipeline_mode<synchronous>, transform_indices = @transform_3, window_bounds = array<i64: 1, 32>}, {transform_indices = @transform_4, window_bounds = array<i64: 1>}, {transform_indices = @transform_5, window_bounds = array<i64: 4, 128>}]} {
    %c0 = arith.constant 0 : index
    %c0_0 = arith.constant 0 : index
    %c0_1 = arith.constant 0 : index
    %0 = vector.load %arg2[%c0, %c0_0, %c0_1] : memref<4x128x32xbf16, #tpu.memory_space<vmem>>, vector<4x128x32xbf16>
    %1 = arith.extf %0 : vector<4x128x32xbf16> to vector<4x128x32xf32>
    %c0_2 = arith.constant 0 : index
    %c0_3 = arith.constant 0 : index
    %2 = vector.load %arg4[%c0_2, %c0_3] : memref<4x32xf32, #tpu.memory_space<vmem>>, vector<4x32xf32>
    %3 = vector.shape_cast %2 : vector<4x32xf32> to vector<4x1x32xf32>
    %4 = vector.broadcast %3 : vector<4x1x32xf32> to vector<4x128x32xf32>
    %5 = arith.addf %1, %4 : vector<4x128x32xf32>
    %6 = math.tanh %5 : vector<4x128x32xf32>
    %c0_4 = arith.constant 0 : index
    %c0_5 = arith.constant 0 : index
    %7 = vector.load %arg5[%c0_4, %c0_5] : memref<1x32xf32, #tpu.memory_space<vmem>>, vector<1x32xf32>
    %8 = vector.shape_cast %7 : vector<1x32xf32> to vector<1x1x32xf32>
    %9 = vector.broadcast %8 : vector<1x1x32xf32> to vector<4x128x32xf32>
    %10 = arith.mulf %6, %9 : vector<4x128x32xf32>
    %cst = arith.constant dense<0.000000e+00> : vector<4x128xf32>
    %11 = vector.multi_reduction <add>, %10, %cst [2] : vector<4x128x32xf32> to vector<4x128xf32>
    %c0_6 = arith.constant 0 : index
    %12 = memref.load %arg6[%c0_6] : memref<1xf32, #tpu.memory_space<smem>>
    %13 = vector.broadcast %12 : f32 to vector<4x128xf32>
    %14 = arith.addf %11, %13 : vector<4x128xf32>
    %c0_7 = arith.constant 0 : index
    %c0_8 = arith.constant 0 : index
    %15 = vector.load %arg3[%c0_7, %c0_8] : memref<4x128xf32, #tpu.memory_space<vmem>>, vector<4x128xf32>
    %16 = arith.addf %14, %15 : vector<4x128xf32>
    %c128_i32 = arith.constant 128 : i32
    %17 = arith.muli %arg1, %c128_i32 : i32
    %18 = tpu.assume_multiple %17, 128 : i32
    %c0_9 = arith.constant 0 : index
    %19 = arith.index_cast %18 : i32 to index
    %20 = vector.load %arg7[%c0_9, %19] : memref<4x128xf32, #tpu.memory_space<vmem>>, vector<4x128xf32>
    tpu.vector_store %arg7[%c0_9, %19], %16 {strides = array<i32>} : memref<4x128xf32, #tpu.memory_space<vmem>>, vector<4x128xf32>,
    %c0_i32 = arith.constant 0 : i32
    %21 = arith.cmpi eq, %arg1, %c0_i32 : i32
    %22 = arith.extui %21 : i1 to i32
    %c0_i32_10 = arith.constant 0 : i32
    %23 = arith.cmpi ne, %22, %c0_i32_10 : i32
    scf.if %23 {
      %c0_11 = arith.constant 0 : index
      %c0_12 = arith.constant 0 : index
      %24 = vector.load %arg7[%c0_11, %c0_12] : memref<4x128xf32, #tpu.memory_space<vmem>>, vector<4x128xf32>
      %cst_13 = arith.constant dense<0xFF800000> : vector<4xf32>
      %25 = vector.multi_reduction <maximumf>, %24, %cst_13 [1] : vector<4x128xf32> to vector<4xf32>
      %26 = vector.shape_cast %25 : vector<4xf32> to vector<4x1xf32>
      %27 = vector.broadcast %26 : vector<4x1xf32> to vector<4x128xf32>
      %28 = arith.subf %24, %27 : vector<4x128xf32>
      %29 = math.exp %28 : vector<4x128xf32>
      %cst_14 = arith.constant dense<0.000000e+00> : vector<4xf32>
      %30 = vector.multi_reduction <add>, %29, %cst_14 [1] : vector<4x128xf32> to vector<4xf32>
      %31 = vector.shape_cast %30 : vector<4xf32> to vector<4x1xf32>
      %32 = tpu.reciprocal %31 {approx = true} : vector<4x1xf32> -> vector<4x1xf32>
      %33 = arith.mulf %31, %32 : vector<4x1xf32>
      %cst_15 = arith.constant 2.000000e+00 : f32
      %34 = vector.broadcast %cst_15 : f32 to vector<4x1xf32>
      %35 = arith.subf %34, %33 : vector<4x1xf32>
      %36 = arith.mulf %32, %35 : vector<4x1xf32>
      %37 = vector.broadcast %36 : vector<4x1xf32> to vector<4x128xf32>
      %38 = arith.mulf %29, %37 : vector<4x128xf32>
      %c0_16 = arith.constant 0 : index
      %c0_17 = arith.constant 0 : index
      %39 = vector.load %arg7[%c0_16, %c0_17] : memref<4x128xf32, #tpu.memory_space<vmem>>, vector<4x128xf32>
      tpu.vector_store %arg7[%c0_16, %c0_17], %38 {strides = array<i32>} : memref<4x128xf32, #tpu.memory_space<vmem>>, vector<4x128xf32>,
    } else {
    }
    return
  }
  func.func @transform_0(%arg0: i32, %arg1: i32) -> (i32, i32, i32) {
    %c0_i32 = arith.constant 0 : i32
    %c0_i32_0 = arith.constant 0 : i32
    return %arg0, %arg1, %c0_i32 : i32, i32, i32
  }
  func.func @transform_1(%arg0: i32, %arg1: i32) -> (i32, i32) {
    %c0_i32 = arith.constant 0 : i32
    return %arg0, %arg1 : i32, i32
  }
  func.func @transform_2(%arg0: i32, %arg1: i32) -> (i32, i32) {
    %c0_i32 = arith.constant 0 : i32
    %c0_i32_0 = arith.constant 0 : i32
    return %arg0, %c0_i32 : i32, i32
  }
  func.func @transform_3(%arg0: i32, %arg1: i32) -> (i32, i32) {
    %c0_i32 = arith.constant 0 : i32
    %c0_i32_0 = arith.constant 0 : i32
    %c0_i32_1 = arith.constant 0 : i32
    return %c0_i32, %c0_i32_0 : i32, i32
  }
  func.func @transform_4(%arg0: i32, %arg1: i32) -> i32 {
    %c0_i32 = arith.constant 0 : i32
    %c0_i32_0 = arith.constant 0 : i32
    return %c0_i32 : i32
  }
  func.func @transform_5(%arg0: i32, %arg1: i32) -> (i32, i32) {
    %c0_i32 = arith.constant 0 : i32
    %c0_i32_0 = arith.constant 0 : i32
    return %arg0, %c0_i32 : i32, i32
  }
}

</mosaic_0001>

<bundles_post_ra>
// kernel: tpu_custom_call.1
= control target key start
LH: loop header
LB: loop body
LE: loop exit
PB: predicated region body
PF: predicated region fallthrough
CT: control target
= control target key end

     0   :  { %v3068_v0 = vlaneseq  ;;  %v2026_v1 = vmov 1966171168   ;;  %s3062_s0 = inlined_call_operand.vmem [shape: bf16[4,128,32], index: 0, kind: input, shape index: {}]   ;;  %s3063_s1 = inlined_call_operand.vmem [shape: f32[4,128], index: 1, kind: input, shape index: {}]   ;;  %s3064_s2 = inlined_call_operand.vmem [shape: f32[4,32], index: 2, kind: input, shape index: {}]   ;;  %s3065_s3 = inlined_call_operand.vmem [shape: f32[1,32], index: 3, kind: input, shape index: {}]   ;;  %s3066_s4 = inlined_call_operand.<no memory space> [shape: f32[1], index: 4, kind: input, shape index: {}]   ;;  %s3067_s5 = inlined_call_operand.hbm [shape: f32[4,128], index: 5, kind: output, shape index: {}]  }
   0x1   :  { %v161_v2 = vunpack.c.l.s4 %v2026_v1  ;;  %v1834_v5 = vld [vmem:[%s3062_s0 + $0x8] sm:$0xff]   ;;  %v2068_v6 = vld.sshfl [vmem:[%s3064_s2] sm:$0x33 pattern:$0x75316420]  ;;  %v1835_v10 = vld [vmem:[%s3062_s0 + $0x10] sm:$0xff]  }
   0x2   :  { %v2060_v3 = vshrl.u32 %v3068_v0, 7  ;;  %v1707_v7 = vld [vmem:[%s3062_s0] sm:$0xff]   ;;  %v1712_v11 = vunpack.c.l.bf16 %v1834_v5  ;;  %v1713_v14 = vunpack.c.h.bf16 %v1834_v5  ;;  %v1836_v16 = vld [vmem:[%s3062_s0 + $0x18] sm:$0xff]   ;;  %v1717_v18 = vunpack.c.h.bf16 %v1835_v10 }
   0x3   :  { %v162_v4 = vunpack.c.0.s8 %v161_v2  ;;  %v1708_v13 = vunpack.c.l.bf16 %v1707_v7  ;;  %v1709_v15 = vunpack.c.h.bf16 %v1707_v7  ;;  %v1716_v19 = vunpack.c.l.bf16 %v1835_v10 }
   0x4   :  { %v2075_v9 = vsub.s32 0, %v2060_v3 }
   0x5   :  { %v165_v8 = vsub.s32 %v162_v4, %v2060_v3 }
   0x7   :  { %v2081_v12 = vrot.slane %v2068_v6, %v165_v8 }
   0x9   :  { %v2088_v17 = vrot.slane %v2081_v12, %v2075_v9 }
   0xa   :  { %11 = vsyncpa [#allocation4], 0  ;;  %v1721_v23 = vunpack.c.h.bf16 %v1836_v16  ;;  %v1720_v25 = vunpack.c.l.bf16 %v1836_v16  ;;  %v1837_v26 = vld [vmem:[%s3062_s0 + $0x20] sm:$0xff]   ;;  %v1838_v33 = vld [vmem:[%s3062_s0 + $0x28] sm:$0xff]   ;;  %v159_v40 = vcombine.high %v2068_v6, %v2068_v6  ;;  %vm395_vm0 = vcmask 261120  }
   0xb   :  { %v198_v20 = vadd.f32 %v1712_v11, %v2088_v17  ;;  %v196_v21 = vadd.f32 %v1708_v13, %v2088_v17  ;;  %v199_v22 = vadd.f32 %v1713_v14, %v2088_v17  ;;  %v197_v24 = vadd.f32 %v1709_v15, %v2088_v17  ;;  %v1839_v38 = vld [vmem:[%s3062_s0 + $0x30] sm:$0xff]   ;;  %v2112_v39 = vld [vmem:[%s3065_s3] ss:$0 sm:$0xff]  ;;  %v1840_v41 = vld [vmem:[%s3062_s0 + $0x38] sm:$0xff]  }
   0xc   :  { %v201_v27 = vadd.f32 %v1717_v18, %v2088_v17  ;;  %v200_v28 = vadd.f32 %v1716_v19, %v2088_v17  ;;  %v203_v29 = vadd.f32 %v1721_v23, %v2088_v17  ;;  %v1725_v30 = vunpack.c.h.bf16 %v1837_v26  ;;  %v1841_v61 = vld [vmem:[%s3062_s0 + $0x40] sm:$0xff]   ;;  %v1842_v18 = vld [vmem:[%s3062_s0 + $0x48] sm:$0xff]  }
   0xd   :  { %1870 = vtanh.f32 %v198_v20  ;;  %v202_v31 = vadd.f32 %v1720_v25, %v2088_v17  ;;  %v1724_v32 = vunpack.c.l.bf16 %v1837_v26  ;;  %v1729_v35 = vunpack.c.h.bf16 %v1838_v33 }
   0xe   :  { %1872 = vtanh.f32 %v196_v21  ;;  %v205_v34 = vadd.f32 %v1725_v30, %v2088_v17  ;;  %v1728_v37 = vunpack.c.l.bf16 %v1838_v33  ;;  %v1733_v44 = vunpack.c.h.bf16 %v1839_v38 }
   0xf   :  { %1874 = vtanh.f32 %v199_v22  ;;  %v204_v36 = vadd.f32 %v1724_v32, %v2088_v17  ;;  %v207_v43 = vadd.f32 %v1729_v35, %v2088_v17  ;;  %v1732_v48 = vunpack.c.l.bf16 %v1839_v38 }
  0x10   :  { %1876 = vtanh.f32 %v197_v24  ;;  %v206_v47 = vadd.f32 %v1728_v37, %v2088_v17  ;;  %v1737_v51 = vunpack.c.h.bf16 %v1840_v41  ;;  %v1736_v55 = vunpack.c.l.bf16 %v1840_v41 }
  0x11   :  { %1878 = vtanh.f32 %v201_v27  ;;  %v2125_v56 = vrot.slane %v159_v40, %v165_v8  ;;  %v209_v60 = vadd.f32 %v1733_v44, %v2088_v17  ;;  %v208_v2 = vadd.f32 %v1732_v48, %v2088_v17  ;;  %v1844_v40 = vld [vmem:[%s3062_s0 + $0x58] sm:$0xff]  }
  0x12   :  { %1880 = vtanh.f32 %v200_v28  ;;  %v1741_v8 = vunpack.c.h.bf16 %v1841_v61  ;;  %v211_v10 = vadd.f32 %v1737_v51, %v2088_v17  ;;  %v1740_v13 = vunpack.c.l.bf16 %v1841_v61  ;;  %v1843_v28 = vld [vmem:[%s3062_s0 + $0x50] sm:$0xff]   ;;  %v1845_v51 = vld [vmem:[%s3062_s0 + $0x60] sm:$0xff]  }
  0x13   :  { %1882 = vtanh.f32 %v203_v29  ;;  %v2141_v11 = vrot.slane %v2125_v56, %v2075_v9  ;;  %v210_v16 = vadd.f32 %v1736_v55, %v2088_v17  ;;  %v1745_v24 = vunpack.c.h.bf16 %v1842_v18 }
  0x14   :  { %1884 = vtanh.f32 %v202_v31  ;;  %v1744_v25 = vunpack.c.l.bf16 %v1842_v18  ;;  %v1748_v35 = vunpack.c.l.bf16 %v1843_v28  ;;  %vm1320_vm1 = vcmask 130112  }
  0x15   :  { %1886 = vtanh.f32 %v205_v34  ;;  %v213_v23 = vadd.f32 %v1741_v8, %v2141_v11  ;;  %v212_v27 = vadd.f32 %v1740_v13, %v2141_v11  ;;  %v215_v33 = vadd.f32 %v1745_v24, %v2141_v11  ;;  %v1848_v24 = vld [vmem:[%s3062_s0 + $0x78] sm:$0xff]  }
  0x16   :  { %1888 = vtanh.f32 %v204_v36  ;;  %v1749_v34 = vunpack.c.h.bf16 %v1843_v28  ;;  %v214_v38 = vadd.f32 %v1744_v25, %v2141_v11  ;;  %vm1327_vm2 = vcmask 195712  }
  0x17   :  { %v1871_v42 = vpop.eup %1870  ;;  %1890 = vtanh.f32 %v207_v43  ;;  %vm1334_vm3 = vcmask 261312   ;;  %vm1341_vm4 = vcmask 326912   ;;  %vm1348_vm5 = vcmask 392512  }
  0x18   :  { %v1873_v45 = vpop.eup %1872  ;;  %v333_v46 = vmul.f32 %v1871_v42, %v2112_v39  ;;  %1892 = vtanh.f32 %v206_v47  ;;  %v1752_v47 = vunpack.c.l.bf16 %v1844_v40  ;;  %vm1355_vm6 = vcmask 458112  }
  0x19   :  { %v1875_v49 = vpop.eup %1874  ;;  %v331_v50 = vmul.f32 %v1873_v45, %v2112_v39  ;;  %1894 = vtanh.f32 %v209_v60  ;;  %v217_v45 = vadd.f32 %v1749_v34, %v2141_v11  ;;  %v1849_v34 = vld [vmem:[%s3062_s0 + $0x80] sm:$0xff]   ;;  %vm1362_vm7 = vcmask 523712  }
  0x1a   :  { %v1877_v52 = vpop.eup %1876  ;;  %v402_v53 = vsel %vm395_vm0, %v333_v46, 0.0  ;;  %v334_v54 = vmul.f32 %v1875_v49, %v2112_v39  ;;  %1896 = vtanh.f32 %v208_v2  ;;  %v1753_v46 = vunpack.c.h.bf16 %v1844_v40 }
  0x1b   :  { %v1879_v57 = vpop.eup %1878  ;;  %403 = vadd.xlane.f32.xlu1 %v402_v53  ;;  %v396_v58 = vsel %vm395_vm0, %v331_v50, 0.0  ;;  %v332_v59 = vmul.f32 %v1877_v52, %v2112_v39  ;;  %1898 = vtanh.f32 %v211_v10  ;;  %v216_v50 = vadd.f32 %v1748_v35, %v2141_v11 }
  0x1c   :  { %v1881_v62 = vpop.eup %1880  ;;  %397 = vadd.xlane.f32.xlu0 %v396_v58  ;;  %v405_v63 = vsel %vm395_vm0, %v334_v54, 0.0  ;;  %v336_v1 = vmul.f32 %v1879_v57, %v2112_v39  ;;  %1900 = vtanh.f32 %v210_v16  ;;  %v219_v57 = vadd.f32 %v1753_v46, %v2141_v11 }
  0x1d   :  { %v1883_v4 = vpop.eup %1882  ;;  %v399_v5 = vsel %vm395_vm0, %v332_v59, 0.0  ;;  %v335_v6 = vmul.f32 %v1881_v62, %v2112_v39  ;;  %1902 = vtanh.f32 %v213_v23  ;;  %v1757_v58 = vunpack.c.h.bf16 %v1845_v51 }
  0x1e   :  { %v1885_v7 = vpop.eup %1884  ;;  %v411_v14 = vsel %vm395_vm0, %v336_v1, 0.0  ;;  %v338_v15 = vmul.f32 %v1883_v4, %v2112_v39  ;;  %1904 = vtanh.f32 %v212_v27  ;;  %v1756_v59 = vunpack.c.l.bf16 %v1845_v51 }
  0x1f   :  { %406 = vadd.xlane.f32.xlu1 %v405_v63  ;;  %v1887_v19 = vpop.eup %1886  ;;  %v408_v20 = vsel %vm395_vm0, %v335_v6, 0.0  ;;  %v337_v21 = vmul.f32 %v1885_v7, %v2112_v39  ;;  %1906 = vtanh.f32 %v215_v33  ;;  %v218_v62 = vadd.f32 %v1752_v47, %v2141_v11  ;;  %v1846_v63 = vld [vmem:[%s3062_s0 + $0x68] sm:$0xff]  }
  0x20   :  { %400 = vadd.xlane.f32.xlu0 %v399_v5  ;;  %v1889_v22 = vpop.eup %1888  ;;  %v417_v26 = vsel %vm395_vm0, %v338_v15, 0.0  ;;  %v340_v17 = vmul.f32 %v1887_v19, %v2112_v39  ;;  %1908 = vtanh.f32 %v214_v38  ;;  %v221_v6 = vadd.f32 %v1757_v58, %v2141_v11  ;;  %v1847_v15 = vld [vmem:[%s3062_s0 + $0x70] sm:$0xff]  }
  0x21   :  { %v1891_v29 = vpop.eup %1890  ;;  %v414_v30 = vsel %vm395_vm0, %v337_v21, 0.0  ;;  %v339_v31 = vmul.f32 %v1889_v22, %v2112_v39  ;;  %1910 = vtanh.f32 %v217_v45  ;;  %v1761_v7 = vunpack.c.h.bf16 %v1846_v63 }
  0x22   :  { %v1893_v32 = vpop.eup %1892  ;;  %v423_v36 = vsel %vm395_vm0, %v340_v17, 0.0  ;;  %v342_v37 = vmul.f32 %v1891_v29, %v2112_v39  ;;  %1912 = vtanh.f32 %v216_v50  ;;  %v1760_v8 = vunpack.c.l.bf16 %v1846_v63  ;;  %v1850_v50 = vld [vmem:[%s3062_s0 + $0x88] sm:$0xff]  }
  0x23   :  { %412 = vadd.xlane.f32.xlu1 %v411_v14  ;;  %v1895_v41 = vpop.eup %1894  ;;  %v420_v42 = vsel %vm395_vm0, %v339_v31, 0.0  ;;  %v341_v43 = vmul.f32 %v1893_v32, %v2112_v39  ;;  %1914 = vtanh.f32 %v219_v57  ;;  %v220_v14 = vadd.f32 %v1756_v59, %v2141_v11 }
  0x24   :  { %409 = vadd.xlane.f32.xlu0 %v408_v20  ;;  %v1897_v44 = vpop.eup %1896  ;;  %v429_v48 = vsel %vm395_vm0, %v342_v37, 0.0  ;;  %v344_v49 = vmul.f32 %v1895_v41, %v2112_v39  ;;  %1916 = vtanh.f32 %v218_v62  ;;  %v223_v21 = vadd.f32 %v1761_v7, %v2141_v11 }
  0x25   :  { %v1899_v52 = vpop.eup %1898  ;;  %v426_v53 = vsel %vm395_vm0, %v341_v43, 0.0  ;;  %v343_v54 = vmul.f32 %v1897_v44, %v2112_v39  ;;  %1918 = vtanh.f32 %v221_v6  ;;  %v1765_v22 = vunpack.c.h.bf16 %v1847_v15 }
  0x26   :  { %v1901_v55 = vpop.eup %1900  ;;  %v435_v60 = vsel %vm395_vm0, %v344_v49, 0.0  ;;  %v346_v61 = vmul.f32 %v1899_v52, %v2112_v39  ;;  %v1764_v23 = vunpack.c.l.bf16 %v1847_v15  ;;  %1920 = vtanh.f32 %v220_v14 }
  0x27   :  { %418 = vadd.xlane.f32.xlu1 %v417_v26  ;;  %v1903_v1 = vpop.eup %1902  ;;  %v432_v2 = vsel %vm395_vm0, %v343_v54, 0.0  ;;  %v345_v4 = vmul.f32 %v1901_v55, %v2112_v39  ;;  %v222_v17 = vadd.f32 %v1760_v8, %v2141_v11  ;;  %v1769_v31 = vunpack.c.h.bf16 %v1848_v24 }
  0x28   :  { %415 = vadd.xlane.f32.xlu0 %v414_v30  ;;  %v1905_v5 = vpop.eup %1904  ;;  %v441_v10 = vsel %vm395_vm0, %v346_v61, 0.0  ;;  %v348_v13 = vmul.f32 %v1903_v1, %v2112_v39  ;;  %1922 = vtanh.f32 %v223_v21  ;;  %v225_v32 = vadd.f32 %v1765_v22, %v2141_v11  ;;  %v1851_v61 = vld [vmem:[%s3062_s0 + $0x90] sm:$0xff]  }
  0x29   :  { %v1907_v16 = vpop.eup %1906  ;;  %v438_v18 = vsel %vm395_vm0, %v345_v4, 0.0  ;;  %v347_v19 = vmul.f32 %v1905_v5, %v2112_v39  ;;  %v1768_v33 = vunpack.c.l.bf16 %v1848_v24  ;;  %v174_v35 = vcombine.high %v2081_v12, %v2081_v12 }
  0x2a   :  { %v1909_v20 = vpop.eup %1908  ;;  %v447_v25 = vsel %vm395_vm0, %v348_v13, 0.0  ;;  %v350_v26 = vmul.f32 %v1907_v16, %v2112_v39  ;;  %1924 = vtanh.f32 %v222_v17  ;;  %v224_v38 = vadd.f32 %v1764_v23, %v2141_v11  ;;  %v1852_v13 = vld [vmem:[%s3062_s0 + $0x98] sm:$0xff]  }
  0x2b   :  { %424 = vadd.xlane.f32.xlu1 %v423_v36  ;;  %v1911_v27 = vpop.eup %1910  ;;  %v444_v28 = vsel %vm395_vm0, %v347_v19, 0.0  ;;  %v349_v29 = vmul.f32 %v1909_v20, %v2112_v39  ;;  %v1773_v44 = vunpack.c.h.bf16 %v1849_v34  ;;  %1926 = vtanh.f32 %v225_v32 }
  0x2c   :  { %421 = vadd.xlane.f32.xlu0 %v420_v42  ;;  %v1913_v30 = vpop.eup %1912  ;;  %v453_v36 = vsel %vm395_vm0, %v350_v26, 0.0  ;;  %v352_v37 = vmul.f32 %v1911_v27, %v2112_v39  ;;  %v227_v45 = vadd.f32 %v1769_v31, %v2141_v11  ;;  %v226_v12 = vadd.f32 %v1768_v33, %v2141_v11 }
  0x2d   :  { %v1915_v40 = vpop.eup %1914  ;;  %v450_v41 = vsel %vm395_vm0, %v349_v29, 0.0  ;;  %v351_v42 = vmul.f32 %v1913_v30, %v2112_v39  ;;  %v2219_v46 = vrot.slane %v174_v35, %v2075_v9  ;;  %1928 = vtanh.f32 %v224_v38  ;;  %v1854_v35 = vld [vmem:[%s3062_s0 + $0xa8] sm:$0xff]  }
  0x2e   :  { %v1917_v43 = vpop.eup %1916  ;;  %v459_v47 = vsel %vm395_vm0, %v352_v37, 0.0  ;;  %v1772_v49 = vunpack.c.l.bf16 %v1849_v34  ;;  %1930 = vtanh.f32 %v227_v45  ;;  %v1777_v55 = vunpack.c.h.bf16 %v1850_v50 }
  0x2f   :  { %430 = vadd.xlane.f32.xlu1 %v429_v48  ;;  %v354_v48 = vmul.f32 %v1915_v40, %v2112_v39  ;;  %v1919_v51 = vpop.eup %1918  ;;  %v456_v52 = vsel %vm395_vm0, %v351_v42, 0.0  ;;  %v229_v54 = vadd.f32 %v1773_v44, %v2219_v46  ;;  %v1776_v57 = vunpack.c.l.bf16 %v1850_v50 }
  0x30   :  { %427 = vadd.xlane.f32.xlu0 %v426_v53  ;;  %v353_v53 = vmul.f32 %v1917_v43, %v2112_v39  ;;  %v1921_v11 = vpop.eup %1920  ;;  %v356_v59 = vmul.f32 %v1919_v51, %v2112_v39  ;;  %1932 = vtanh.f32 %v226_v12  ;;  %v231_v4 = vadd.f32 %v1777_v55, %v2219_v46 }
  0x31   :  { %v465_v58 = vsel %vm395_vm0, %v354_v48, 0.0  ;;  %v355_v1 = vmul.f32 %v1921_v11, %v2112_v39  ;;  %1934 = vtanh.f32 %v229_v54  ;;  %v1781_v5 = vunpack.c.h.bf16 %v1851_v61  ;;  %v1856_v54 = vld [vmem:[%s3062_s0 + $0xb8] sm:$0xff]  }
  0x32   :  { %v1923_v62 = vpop.eup %1922  ;;  %v462_v63 = vsel %vm395_vm0, %v353_v53, 0.0  ;;  %v1780_v6 = vunpack.c.l.bf16 %v1851_v61  ;;  %v471_v7 = vsel %vm395_vm0, %v356_v59, 0.0  ;;  %v1785_v20 = vunpack.c.h.bf16 %v1852_v13 }
  0x33   :  { %436 = vadd.xlane.f32.xlu1 %v435_v60  ;;  %v228_v60 = vadd.f32 %v1772_v49, %v2219_v46  ;;  %v358_v8 = vmul.f32 %v1923_v62, %v2112_v39  ;;  %v468_v15 = vsel %vm395_vm0, %v355_v1, 0.0  ;;  %v233_v19 = vadd.f32 %v1781_v5, %v2219_v46 }
  0x34   :  { %433 = vadd.xlane.f32.xlu0 %v432_v2  ;;  %v1925_v2 = vpop.eup %1924  ;;  %v1784_v21 = vunpack.c.l.bf16 %v1852_v13  ;;  %v232_v24 = vadd.f32 %v1780_v6, %v2219_v46  ;;  %v235_v29 = vadd.f32 %v1785_v20, %v2219_v46  ;;  %v1793_v42 = vunpack.c.h.bf16 %v1854_v35 }
  0x35   :  { %1936 = vtanh.f32 %v228_v60  ;;  %v1927_v14 = vpop.eup %1926  ;;  %v357_v16 = vmul.f32 %v1925_v2, %v2112_v39  ;;  %v477_v22 = vsel %vm395_vm0, %v358_v8, 0.0  ;;  %v1792_v43 = vunpack.c.l.bf16 %v1854_v35  ;;  %v1857_v8 = vld [vmem:[%s3062_s0 + $0xc0] sm:$0xff]  }
  0x36   :  { %1938 = vtanh.f32 %v231_v4  ;;  %v360_v23 = vmul.f32 %v1927_v14, %v2112_v39  ;;  %v234_v34 = vadd.f32 %v1784_v21, %v2219_v46  ;;  %v1800_v2 = vunpack.c.l.bf16 %v1856_v54 }
  0x37   :  { %442 = vadd.xlane.f32.xlu1 %v441_v10  ;;  %v230_v10 = vadd.f32 %v1776_v57, %v2219_v46  ;;  %v474_v17 = vsel %vm395_vm0, %v357_v16, 0.0  ;;  %v238_v53 = vadd.f32 %v1792_v43, %v2219_v46  ;;  %v175_v4 = vcombine.high %v2125_v56, %v2125_v56 }
  0x38   :  { %439 = vadd.xlane.f32.xlu0 %v438_v18  ;;  %v1929_v18 = vpop.eup %1928  ;;  %v483_v32 = vsel %vm395_vm0, %v360_v23, 0.0  ;;  %v242_v16 = vadd.f32 %v1800_v2, %v2219_v46  ;;  %v1858_v23 = vld [vmem:[%s3062_s0 + $0xc8] sm:$0xff]   ;;  %vm1369_vm8 = vcmask 589312   ;;  %vm1376_vm9 = vcmask 654912  }
  0x39   :  { %1940 = vtanh.f32 %v230_v10  ;;  %v1931_v26 = vpop.eup %1930  ;;  %v359_v27 = vmul.f32 %v1929_v18, %v2112_v39  ;;  %v1805_v18 = vunpack.c.h.bf16 %v1857_v8  ;;  %vm1383_vm10 = vcmask 720512  }
  0x3a   :  { %1942 = vtanh.f32 %v233_v19  ;;  %v362_v33 = vmul.f32 %v1931_v26, %v2112_v39  ;;  %v2296_v19 = vrot.slane %v175_v4, %v2075_v9  ;;  %vm1390_vm11 = vcmask 786112  }
  0x3b   :  { %448 = vadd.xlane.f32.xlu1 %v447_v25  ;;  %v1853_v25 = vld [vmem:[%s3062_s0 + $0xa0] sm:$0xff]   ;;  %1944 = vtanh.f32 %v232_v24  ;;  %v480_v37 = vsel %vm395_vm0, %v359_v27, 0.0  ;;  %v1809_v27 = vunpack.c.h.bf16 %v1858_v23  ;;  %vm1397_vm12 = vcmask 851712  }
  0x3c   :  { %445 = vadd.xlane.f32.xlu0 %v444_v28  ;;  %v1933_v28 = vpop.eup %1932  ;;  %v1789_v30 = vunpack.c.h.bf16 %v1853_v25  ;;  %v1788_v31 = vunpack.c.l.bf16 %v1853_v25  ;;  %1946 = vtanh.f32 %v235_v29  ;;  %v489_v44 = vsel %vm395_vm0, %v362_v33, 0.0 }
  0x3d   :  { %v361_v38 = vmul.f32 %v1933_v28, %v2112_v39  ;;  %1948 = vtanh.f32 %v234_v34  ;;  %v1808_v28 = vunpack.c.l.bf16 %v1858_v23  ;;  %vm1404_vm13 = vcmask 917312  }
  0x3e   :  { %v236_v12 = vadd.f32 %v1788_v31, %v2219_v46  ;;  %vm1411_vm14 = vcmask 982912   ;;  %vm1418_vm15 = vcmask 1048512  }
  0x3f   :  { %454 = vadd.xlane.f32.xlu1 %v453_v36  ;;  %v1935_v36 = vpop.eup %1934  ;;  %v486_v49 = vsel %vm395_vm0, %v361_v38, 0.0  ;;  %v246_v38 = vadd.f32 %v1808_v28, %v2296_v19  ;;  %v1864_v28 = vld [vmem:[%s3062_s0 + $0xf8] sm:$0xff]  }
  0x40   :  { %451 = vadd.xlane.f32.xlu0 %v450_v41  ;;  %v1937_v40 = vpop.eup %1936  ;;  %v237_v41 = vadd.f32 %v1789_v30, %v2219_v46  ;;  %v364_v45 = vmul.f32 %v1935_v36, %v2112_v39 }
  0x41   :  { %v1939_v48 = vpop.eup %1938  ;;  %v363_v50 = vmul.f32 %v1937_v40, %v2112_v39 }
  0x42   :  { %1950 = vtanh.f32 %v237_v41  ;;  %v495_v55 = vsel %vm395_vm0, %v364_v45, 0.0  ;;  %v366_v57 = vmul.f32 %v1939_v48, %v2112_v39 }
  0x43   :  { %460 = vadd.xlane.f32.xlu1 %v459_v47  ;;  %v1855_v47 = vld [vmem:[%s3062_s0 + $0xb0] sm:$0xff]   ;;  %v1941_v51 = vpop.eup %1940  ;;  %1952 = vtanh.f32 %v236_v12  ;;  %v492_v60 = vsel %vm395_vm0, %v363_v50, 0.0 }
  0x44   :  { %457 = vadd.xlane.f32.xlu0 %v456_v52  ;;  %v239_v52 = vadd.f32 %v1793_v42, %v2219_v46  ;;  %v1797_v11 = vunpack.c.h.bf16 %v1855_v47  ;;  %v1943_v59 = vpop.eup %1942  ;;  %v365_v61 = vmul.f32 %v1941_v51, %v2112_v39  ;;  %v501_v5 = vsel %vm395_vm0, %v366_v57, 0.0 }
  0x45   :  { %v1945_v62 = vpop.eup %1944  ;;  %v368_v6 = vmul.f32 %v1943_v59, %v2112_v39 }
  0x46   :  { %1954 = vtanh.f32 %v239_v52  ;;  %v241_v1 = vadd.f32 %v1797_v11, %v2219_v46  ;;  %v1947_v10 = vpop.eup %1946  ;;  %v498_v13 = vsel %vm395_vm0, %v365_v61, 0.0  ;;  %v367_v14 = vmul.f32 %v1945_v62, %v2112_v39 }
  0x47   :  { %466 = vadd.xlane.f32.xlu1 %v465_v58  ;;  %v1796_v58 = vunpack.c.l.bf16 %v1855_v47  ;;  %1956 = vtanh.f32 %v238_v53  ;;  %v507_v20 = vsel %vm395_vm0, %v368_v6, 0.0  ;;  %v370_v21 = vmul.f32 %v1947_v10, %v2112_v39 }
  0x48   :  { %463 = vadd.xlane.f32.xlu0 %v462_v63  ;;  %v1801_v63 = vunpack.c.h.bf16 %v1856_v54  ;;  %1958 = vtanh.f32 %v241_v1  ;;  %v504_v25 = vsel %vm395_vm0, %v367_v14, 0.0  ;;  %v1861_v54 = vld [vmem:[%s3062_s0 + $0xe0] sm:$0xff]  }
  0x49   :  { %v513_v29 = vsel %vm395_vm0, %v370_v21, 0.0  ;;  %v1821_v62 = vunpack.c.h.bf16 %v1861_v54  ;;  %v1820_v4 = vunpack.c.l.bf16 %v1861_v54 }
  0x4a   :  { %v243_v56 = vadd.f32 %v1801_v63, %v2219_v46  ;;  %v1862_v63 = vld [vmem:[%s3062_s0 + $0xe8] sm:$0xff]  }
  0x4b   :  { %472 = vadd.xlane.f32.xlu1 %v471_v7  ;;  %v240_v7 = vadd.f32 %v1796_v58, %v2219_v46  ;;  %v1825_v10 = vunpack.c.h.bf16 %v1862_v63  ;;  %v1824_v14 = vunpack.c.l.bf16 %v1862_v63 }
  0x4c   :  { %469 = vadd.xlane.f32.xlu0 %v468_v15  ;;  %v1949_v15 = vpop.eup %1948 }
  0x4d   :  { %1960 = vtanh.f32 %v240_v7  ;;  %v1951_v24 = vpop.eup %1950  ;;  %v369_v46 = vmul.f32 %v1949_v15, %v2112_v39 }
  0x4e   :  { %v1953_v26 = vpop.eup %1952  ;;  %1962 = vtanh.f32 %v243_v56  ;;  %v372_v30 = vmul.f32 %v1951_v24, %v2112_v39  ;;  %v255_v24 = vadd.f32 %v1825_v10, %v2296_v19 }
  0x4f   :  { %478 = vadd.xlane.f32.xlu1 %v477_v22  ;;  %v1804_v22 = vunpack.c.l.bf16 %v1857_v8  ;;  %1964 = vtanh.f32 %v242_v16  ;;  %v510_v34 = vsel %vm395_vm0, %v369_v46, 0.0  ;;  %v371_v35 = vmul.f32 %v1953_v26, %v2112_v39 }
  0x50   :  { %475 = vadd.xlane.f32.xlu0 %v474_v17  ;;  %v245_v17 = vadd.f32 %v1805_v18, %v2296_v19  ;;  %v1955_v33 = vpop.eup %1954  ;;  %v519_v41 = vsel %vm395_vm0, %v372_v30, 0.0  ;;  %v252_v16 = vadd.f32 %v1820_v4, %v2296_v19  ;;  %v1863_v18 = vld [vmem:[%s3062_s0 + $0xf0] sm:$0xff]  }
  0x51   :  { %v244_v31 = vadd.f32 %v1804_v22, %v2296_v19  ;;  %v1957_v36 = vpop.eup %1956  ;;  %v374_v42 = vmul.f32 %v1955_v33, %v2112_v39  ;;  %v516_v12 = vsel %vm395_vm0, %v371_v35, 0.0  ;;  %v1829_v46 = vunpack.c.h.bf16 %v1863_v18 }
  0x52   :  { %1966 = vtanh.f32 %v245_v17  ;;  %v1959_v45 = vpop.eup %1958  ;;  %v373_v47 = vmul.f32 %v1957_v36, %v2112_v39 }
  0x53   :  { %484 = vadd.xlane.f32.xlu1 %v483_v32  ;;  %v1859_v32 = vld [vmem:[%s3062_s0 + $0xd0] sm:$0xff]   ;;  %1968 = vtanh.f32 %v244_v31  ;;  %v525_v52 = vsel %vm395_vm0, %v374_v42, 0.0  ;;  %v376_v53 = vmul.f32 %v1959_v45, %v2112_v39  ;;  %v257_v33 = vadd.f32 %v1829_v46, %v2296_v19 }
  0x54   :  { %481 = vadd.xlane.f32.xlu0 %v480_v37  ;;  %v247_v37 = vadd.f32 %v1809_v27, %v2296_v19  ;;  %v1813_v40 = vunpack.c.h.bf16 %v1859_v32  ;;  %v1812_v43 = vunpack.c.l.bf16 %v1859_v32  ;;  %v522_v57 = vsel %vm395_vm0, %v373_v47, 0.0 }
  0x55   :  { %v531_v1 = vsel %vm395_vm0, %v376_v53, 0.0  ;;  %v1828_v27 = vunpack.c.l.bf16 %v1863_v18 }
  0x56   :  { %1970 = vtanh.f32 %v247_v37  ;;  %v248_v11 = vadd.f32 %v1812_v43, %v2296_v19 }
  0x57   :  { %490 = vadd.xlane.f32.xlu1 %v489_v44  ;;  %v1860_v44 = vld [vmem:[%s3062_s0 + $0xd8] sm:$0xff]   ;;  %v1961_v48 = vpop.eup %1960  ;;  %1972 = vtanh.f32 %v246_v38  ;;  %v256_v37 = vadd.f32 %v1828_v27, %v2296_v19  ;;  %v1832_v38 = vunpack.c.l.bf16 %v1864_v28 }
  0x58   :  { %487 = vadd.xlane.f32.xlu0 %v486_v49  ;;  %v249_v49 = vadd.f32 %v1813_v40, %v2296_v19  ;;  %v1817_v50 = vunpack.c.h.bf16 %v1860_v44  ;;  %v1816_v51 = vunpack.c.l.bf16 %v1860_v44  ;;  %v375_v58 = vmul.f32 %v1961_v48, %v2112_v39 }
  0x59   :  { %v258_v47 = vadd.f32 %v1832_v38, %v2296_v19 }
  0x5a   :  { %1974 = vtanh.f32 %v249_v49  ;;  %v250_v61 = vadd.f32 %v1816_v51, %v2296_v19  ;;  %v528_v6 = vsel %vm395_vm0, %v375_v58, 0.0 }
  0x5b   :  { %496 = vadd.xlane.f32.xlu1 %v495_v55  ;;  %v1963_v55 = vpop.eup %1962  ;;  %1976 = vtanh.f32 %v248_v11 }
  0x5c   :  { %493 = vadd.xlane.f32.xlu0 %v492_v60  ;;  %v1965_v59 = vpop.eup %1964  ;;  %v251_v60 = vadd.f32 %v1817_v50, %v2296_v19  ;;  %v378_v2 = vmul.f32 %v1963_v55, %v2112_v39 }
  0x5d   :  { %v377_v7 = vmul.f32 %v1965_v59, %v2112_v39 }
  0x5e   :  { %1978 = vtanh.f32 %v251_v60  ;;  %v537_v15 = vsel %vm395_vm0, %v378_v2, 0.0 }
  0x5f   :  { %502 = vadd.xlane.f32.xlu1 %v501_v5  ;;  %v1967_v5 = vpop.eup %1966  ;;  %1980 = vtanh.f32 %v250_v61  ;;  %v534_v21 = vsel %vm395_vm0, %v377_v7, 0.0 }
  0x60   :  { %499 = vadd.xlane.f32.xlu0 %v498_v13  ;;  %v1969_v8 = vpop.eup %1968  ;;  %v253_v13 = vadd.f32 %v1821_v62, %v2296_v19  ;;  %v380_v56 = vmul.f32 %v1967_v5, %v2112_v39 }
  0x61   :  { %v379_v22 = vmul.f32 %v1969_v8, %v2112_v39 }
  0x62   :  { %1982 = vtanh.f32 %v253_v13  ;;  %v543_v26 = vsel %vm395_vm0, %v380_v56, 0.0  ;;  %v2392_v56 = vld [vmem:[%s3063_s1] sm:$0xf] }
  0x63   :  { %508 = vadd.xlane.f32.xlu1 %v507_v20  ;;  %v1971_v20 = vpop.eup %1970  ;;  %1984 = vtanh.f32 %v252_v16  ;;  %v540_v30 = vsel %vm395_vm0, %v379_v22, 0.0  ;;  %v659_v16 = vrot.slane %v2392_v56, %v2075_v9 }
  0x64   :  { %505 = vadd.xlane.f32.xlu0 %v504_v25  ;;  %v1973_v23 = vpop.eup %1972  ;;  %v254_v25 = vadd.f32 %v1824_v14, %v2296_v19  ;;  %v382_v17 = vmul.f32 %v1971_v20, %v2112_v39  ;;  %1986 = vtanh.f32 %v255_v24  ;;  %v2027_v20 = vmov 0  }
  0x65   :  { %v381_v31 = vmul.f32 %v1973_v23, %v2112_v39  ;;  %1868 = vset.pattern.permute.xlu0 %v2027_v20  ;;  %1869 = vset.pattern.permute.xlu1 %v2027_v20 }
  0x66   :  { %1988 = vtanh.f32 %v254_v25  ;;  %v549_v35 = vsel %vm395_vm0, %v382_v17, 0.0 }
  0x67   :  { %514 = vadd.xlane.f32.xlu1 %v513_v29  ;;  %v1975_v29 = vpop.eup %1974  ;;  %1990 = vtanh.f32 %v257_v33 }
  0x68   :  { %511 = vadd.xlane.f32.xlu0 %v510_v34  ;;  %v1977_v32 = vpop.eup %1976  ;;  %v1833_v34 = vunpack.c.h.bf16 %v1864_v28  ;;  %v384_v36 = vmul.f32 %v1975_v29, %v2112_v39  ;;  %1992 = vtanh.f32 %v256_v37 }
  0x69   :  { %v1979_v40 = vpop.eup %1978  ;;  %v383_v42 = vmul.f32 %v1977_v32, %v2112_v39 }
  0x6a   :  { %v1981_v43 = vpop.eup %1980  ;;  %v259_v44 = vadd.f32 %v1833_v34, %v2296_v19  ;;  %v555_v45 = vsel %vm395_vm0, %v384_v36, 0.0 }
  0x6b   :  { %520 = vadd.xlane.f32.xlu1 %v519_v41  ;;  %v546_v41 = vsel %vm395_vm0, %v381_v31, 0.0  ;;  %v552_v49 = vsel %vm395_vm0, %v383_v42, 0.0  ;;  %v385_v50 = vmul.f32 %v1981_v43, %v2112_v39 }
  0x6c   :  { %517 = vadd.xlane.f32.xlu0 %v516_v12  ;;  %v386_v12 = vmul.f32 %v1979_v40, %v2112_v39  ;;  %v1983_v48 = vpop.eup %1982  ;;  %1994 = vtanh.f32 %v259_v44 }
  0x6d   :  { %v1985_v51 = vpop.eup %1984  ;;  %v388_v11 = vmul.f32 %v1983_v48, %v2112_v39  ;;  %1996 = vtanh.f32 %v258_v47  ;;  %v558_v55 = vsel %vm395_vm0, %v385_v50, 0.0 }
  0x6e   :  { %v561_v53 = vsel %vm395_vm0, %v386_v12, 0.0  ;;  %v387_v19 = vmul.f32 %v1985_v51, %v2112_v39 }
  0x6f   :  { %526 = vadd.xlane.f32.xlu1 %v525_v52  ;;  %v1987_v52 = vpop.eup %1986 }
  0x70   :  { %523 = vadd.xlane.f32.xlu0 %v522_v57  ;;  %v1989_v54 = vpop.eup %1988  ;;  %v567_v57 = vsel %vm395_vm0, %v388_v11, 0.0  ;;  %v390_v58 = vmul.f32 %v1987_v52, %v2112_v39  ;;  %v564_v60 = vsel %vm395_vm0, %v387_v19, 0.0  ;;  %v859_v11 = vsub.s32 3, %v2060_v3 }
  0x71   :  { %v1991_v59 = vpop.eup %1990  ;;  %v389_v61 = vmul.f32 %v1989_v54, %v2112_v39 }
  0x72   :  { %v1993_v62 = vpop.eup %1992  ;;  %v573_v63 = vsel %vm395_vm0, %v390_v58, 0.0  ;;  %v860_v19 = vrot.slane %v2392_v56, %v859_v11 }
  0x73   :  { %532 = vadd.xlane.f32.xlu1 %v531_v1  ;;  %v392_v1 = vmul.f32 %v1991_v59, %v2112_v39  ;;  %v570_v4 = vsel %vm395_vm0, %v389_v61, 0.0  ;;  %v391_v5 = vmul.f32 %v1993_v62, %v2112_v39 }
  0x74   :  { %529 = vadd.xlane.f32.xlu0 %v528_v6 }
  0x75   :  { %v579_v7 = vsel %vm395_vm0, %v392_v1, 0.0  ;;  %v576_v10 = vsel %vm395_vm0, %v391_v5, 0.0 }
  0x76   :  { %v1995_v2 = vpop.eup %1994 }
  0x77   :  { %538 = vadd.xlane.f32.xlu1 %v537_v15  ;;  %v1997_v6 = vpop.eup %1996  ;;  %v394_v8 = vmul.f32 %v1995_v2, %v2112_v39 }
  0x78   :  { %535 = vadd.xlane.f32.xlu0 %v534_v21  ;;  %v393_v13 = vmul.f32 %v1997_v6, %v2112_v39 }
  0x79   :  { %v585_v14 = vsel %vm395_vm0, %v394_v8, 0.0 }
  0x7a   :  { %v582_v15 = vsel %vm395_vm0, %v393_v13, 0.0  ;;  %vm1657_vm0 = vcmask 1041409  }
  0x7b   :  { %544 = vadd.xlane.f32.xlu1 %v543_v26 }
  0x7c   :  { %541 = vadd.xlane.f32.xlu0 %v540_v30  ;;  %v725_v30 = vsub.s32 1, %v2060_v3 }
  0x7e   :  { %v726_v33 = vrot.slane %v2392_v56, %v725_v30 }
  0x7f   :  { %550 = vadd.xlane.f32.xlu1 %v549_v35 }
  0x80   :  { %547 = vadd.xlane.f32.xlu0 %v546_v41 }
  0x83   :  { %556 = vadd.xlane.f32.xlu1 %v555_v45 }
  0x84   :  { %553 = vadd.xlane.f32.xlu0 %v552_v49  ;;  %v792_v49 = vsub.s32 2, %v2060_v3 }
  0x86   :  { %v793_v52 = vrot.slane %v2392_v56, %v792_v49 }
  0x87   :  { %562 = vadd.xlane.f32.xlu1 %v561_v53 }
  0x88   :  { %559 = vadd.xlane.f32.xlu0 %v558_v55 }
  0x8b   :  { %568 = vadd.xlane.f32.xlu1 %v567_v57 }
  0x8c   :  { %565 = vadd.xlane.f32.xlu0 %v564_v60 }
  0x8f   :  { %574 = vadd.xlane.f32.xlu1 %v573_v63 }
  0x90   :  { %571 = vadd.xlane.f32.xlu0 %v570_v4 }
  0x93   :  { %580 = vadd.xlane.f32.xlu1 %v579_v7 }
  0x94   :  { %577 = vadd.xlane.f32.xlu0 %v576_v10 }
  0x97   :  { %586 = vadd.xlane.f32.xlu1 %v585_v14 }
  0x98   :  { %583 = vadd.xlane.f32.xlu0 %v582_v15 }
  0xa8   :  { %665 = vbcast.lane.b32.xlu1 %v659_v16, 264  ;;  %v2396_v18 = vpop.xlane.xlu1 %403 }
  0xa9   :  { %v2398_v39 = vpop.xlane.xlu0 %397 }
  0xac   :  { %669 = vbcast.lane.b32.xlu1 %v659_v16, 272  ;;  %v2400_v21 = vpop.xlane.xlu1 %406 }
  0xad   :  { %v2402_v22 = vpop.xlane.xlu0 %400 }
  0xae   :  { %661 = vbcast.lane.b32.xlu0 %v659_v16, 256 }
  0xb0   :  { %673 = vbcast.lane.b32.xlu1 %v659_v16, 280  ;;  %v2404_v23 = vpop.xlane.xlu1 %412 }
  0xb1   :  { %v2406_v24 = vpop.xlane.xlu0 %409 }
  0xb2   :  { %677 = vbcast.lane.b32.xlu0 %v659_v16, 288 }
  0xb4   :  { %681 = vbcast.lane.b32.xlu1 %v659_v16, 296  ;;  %v2408_v9 = vpop.xlane.xlu1 %418 }
  0xb5   :  { %v2410_v25 = vpop.xlane.xlu0 %415 }
  0xb6   :  { %685 = vbcast.lane.b32.xlu0 %v659_v16, 304 }
  0xb8   :  { %689 = vbcast.lane.b32.xlu1 %v659_v16, 312  ;;  %v2412_v46 = vpop.xlane.xlu1 %424 }
  0xb9   :  { %v2414_v26 = vpop.xlane.xlu0 %421 }
  0xba   :  { %693 = vbcast.lane.b32.xlu0 %v659_v16, 320 }
  0xbc   :  { %697 = vbcast.lane.b32.xlu1 %v659_v16, 328  ;;  %v2416_v17 = vpop.xlane.xlu1 %430 }
  0xbd   :  { %3069 = vst [vmem:[#allocation6_spill] sm:$0xff] %v2416_v17  ;;  %v2418_v27 = vpop.xlane.xlu0 %427 }
  0xbe   :  { %701 = vbcast.lane.b32.xlu0 %v659_v16, 336 }
  0xc0   :  { %705 = vbcast.lane.b32.xlu1 %v659_v16, 344  ;;  %v2420_v28 = vpop.xlane.xlu1 %436 }
  0xc1   :  { %3070 = vst [vmem:[#allocation7_spill] sm:$0xff] %v2420_v28  ;;  %v2422_v29 = vpop.xlane.xlu0 %433 }
  0xc2   :  { %3071 = vst [vmem:[#allocation8_spill] sm:$0xff] %v2422_v29  ;;  %709 = vbcast.lane.b32.xlu0 %v659_v16, 352 }
  0xc4   :  { %713 = vbcast.lane.b32.xlu1 %v659_v16, 360  ;;  %v2425_v31 = vpop.xlane.xlu1 %442 }
  0xc5   :  { %3072 = vst [vmem:[#allocation9_spill] sm:$0xff] %v2425_v31  ;;  %v2427_v32 = vpop.xlane.xlu0 %439 }
  0xc6   :  { %3073 = vst [vmem:[#allocation10_spill] sm:$0xff] %v2427_v32  ;;  %717 = vbcast.lane.b32.xlu0 %v659_v16, 368 }
  0xc8   :  { %721 = vbcast.lane.b32.xlu1 %v659_v16, 376  ;;  %v2430_v34 = vpop.xlane.xlu1 %448 }
  0xc9   :  { %v2432_v35 = vpop.xlane.xlu0 %445 }
  0xca   :  { %728 = vbcast.lane.b32.xlu0 %v726_v33, 256 }
  0xcc   :  { %732 = vbcast.lane.b32.xlu1 %v726_v33, 264  ;;  %v2434_v36 = vpop.xlane.xlu1 %454 }
  0xcd   :  { %v2436_v37 = vpop.xlane.xlu0 %451 }
  0xce   :  { %736 = vbcast.lane.b32.xlu0 %v726_v33, 272 }
  0xd0   :  { %740 = vbcast.lane.b32.xlu1 %v726_v33, 280  ;;  %v2438_v38 = vpop.xlane.xlu1 %460 }
  0xd1   :  { %v2440_v40 = vpop.xlane.xlu0 %457 }
  0xd2   :  { %744 = vbcast.lane.b32.xlu0 %v726_v33, 288 }
  0xd4   :  { %748 = vbcast.lane.b32.xlu1 %v726_v33, 296  ;;  %v2442_v41 = vpop.xlane.xlu1 %466 }
  0xd5   :  { %v2444_v42 = vpop.xlane.xlu0 %463 }
  0xd6   :  { %752 = vbcast.lane.b32.xlu0 %v726_v33, 304 }
  0xd8   :  { %756 = vbcast.lane.b32.xlu1 %v726_v33, 312  ;;  %v2446_v43 = vpop.xlane.xlu1 %472 }
  0xd9   :  { %v2448_v44 = vpop.xlane.xlu0 %469 }
  0xda   :  { %760 = vbcast.lane.b32.xlu0 %v726_v33, 320 }
  0xdc   :  { %764 = vbcast.lane.b32.xlu1 %v726_v33, 328  ;;  %v2450_v45 = vpop.xlane.xlu1 %478 }
  0xdd   :  { %3074 = vst [vmem:[#allocation11_spill] sm:$0xff] %v2450_v45  ;;  %v2452_v12 = vpop.xlane.xlu0 %475 }
  0xde   :  { %768 = vbcast.lane.b32.xlu0 %v726_v33, 336 }
  0xe0   :  { %772 = vbcast.lane.b32.xlu1 %v726_v33, 344  ;;  %v2454_v47 = vpop.xlane.xlu1 %484 }
  0xe1   :  { %3075 = vst [vmem:[#allocation12_spill] sm:$0xff] %v2454_v47  ;;  %v2456_v48 = vpop.xlane.xlu0 %481 }
  0xe2   :  { %3076 = vst [vmem:[#allocation13_spill] sm:$0xff] %v2456_v48  ;;  %776 = vbcast.lane.b32.xlu0 %v726_v33, 352 }
  0xe4   :  { %780 = vbcast.lane.b32.xlu1 %v726_v33, 360  ;;  %v2459_v50 = vpop.xlane.xlu1 %490 }
  0xe5   :  { %3077 = vst [vmem:[#allocation14_spill] sm:$0xff] %v2459_v50  ;;  %v2461_v51 = vpop.xlane.xlu0 %487  ;;  %v2533_v50 = vstv %s3066_s4  ;;  %s2028_s4 = smov [#allocation3]  }
  0xe6   :  { %3078 = vst [vmem:[#allocation15_spill] sm:$0xff] %v2461_v51  ;;  %784 = vbcast.lane.b32.xlu0 %v726_v33, 368  ;;  %s1695_s8 = sshll.u32 %s2028_s4, 4  ;;  %s1696_s8 = int_to_ptr.vmem [resolvable:$true] %s1695_s8 }
  0xe7   :  { %s2002_s9 = scalar_lea.vmem %s1696_s8, 64  ;;  %p2007_p1 = scmp.lt.s32.totalorder %s1696_s8, %s1696_s8 }
  0xe8   :  { %788 = vbcast.lane.b32.xlu1 %v726_v33, 376  ;;  %v2464_v53 = vpop.xlane.xlu1 %496  ;;  %p2003_p0 = scmp.ne.s32.totalorder %s1696_s8, %s2002_s9  ;;  %p2008_p2 = scmp.lt.s32.totalorder %s2002_s9, %s2002_s9 }
  0xe9   :  { %v2467_v54 = vpop.xlane.xlu0 %493 }
  0xea   :  { %795 = vbcast.lane.b32.xlu0 %v793_v52, 256  ;;  %p2009_p3 = por %p2008_p2, %p2007_p1 }
  0xec   :  { %799 = vbcast.lane.b32.xlu1 %v793_v52, 264  ;;  %v2469_v55 = vpop.xlane.xlu1 %502  ;;  %p2010_p4 = pnand %p2009_p3, %p2003_p0 }
  0xed   :  { %v2472_v57 = vpop.xlane.xlu0 %499 }
  0xee   :  { %803 = vbcast.lane.b32.xlu0 %v793_v52, 272 }
  0xf0   :  { %862 = vbcast.lane.b32.xlu1 %v860_v19, 256  ;;  %v2474_v58 = vpop.xlane.xlu1 %508 }
  0xf1   :  { %v2476_v59 = vpop.xlane.xlu0 %505 }
  0xf2   :  { %866 = vbcast.lane.b32.xlu0 %v860_v19, 264 }
  0xf4   :  { %807 = vbcast.lane.b32.xlu1 %v793_v52, 280  ;;  %v2478_v60 = vpop.xlane.xlu1 %514 }
  0xf5   :  { %v2480_v61 = vpop.xlane.xlu0 %511 }
  0xf6   :  { %870 = vbcast.lane.b32.xlu0 %v860_v19, 272 }
  0xf8   :  { %811 = vbcast.lane.b32.xlu1 %v793_v52, 288  ;;  %v2482_v62 = vpop.xlane.xlu1 %520 }
  0xf9   :  { %3079 = vst [vmem:[#allocation16_spill] sm:$0xff] %v2482_v62  ;;  %v2484_v63 = vpop.xlane.xlu0 %517 }
  0xfa   :  { %874 = vbcast.lane.b32.xlu0 %v860_v19, 280 }
  0xfc   :  { %815 = vbcast.lane.b32.xlu1 %v793_v52, 296  ;;  %v2486_v1 = vpop.xlane.xlu1 %526 }
  0xfd   :  { %3080 = vst [vmem:[#allocation17_spill] sm:$0xff] %v2486_v1  ;;  %v2488_v2 = vpop.xlane.xlu0 %523 }
  0xfe   :  { %3081 = vst [vmem:[#allocation18_spill] sm:$0xff] %v2488_v2  ;;  %878 = vbcast.lane.b32.xlu0 %v860_v19, 288 }
 0x100   :  { %819 = vbcast.lane.b32.xlu1 %v793_v52, 304  ;;  %v2490_v4 = vpop.xlane.xlu1 %532 }
 0x101   :  { %3082 = vst [vmem:[#allocation19_spill] sm:$0xff] %v2490_v4  ;;  %v2492_v5 = vpop.xlane.xlu0 %529  ;;  %v591_v4 = vadd.f32 %v2533_v50, %v2402_v22 }
 0x102   :  { %3083 = vst [vmem:[#allocation20_spill] sm:$0xff] %v2492_v5  ;;  %882 = vbcast.lane.b32.xlu0 %v860_v19, 296 }
 0x104   :  { %823 = vbcast.lane.b32.xlu1 %v793_v52, 312  ;;  %v2494_v6 = vpop.xlane.xlu1 %538 }
 0x105   :  { %3084 = vst [vmem:[#allocation21_spill] sm:$0xff] %v2494_v6  ;;  %v2496_v7 = vpop.xlane.xlu0 %535 }
 0x106   :  { %3085 = vst [vmem:[#allocation22_spill] sm:$0xff] %v2496_v7  ;;  %886 = vbcast.lane.b32.xlu0 %v860_v19, 304 }
 0x108   :  { %827 = vbcast.lane.b32.xlu1 %v793_v52, 320  ;;  %v2498_v8 = vpop.xlane.xlu1 %544 }
 0x109   :  { %v2500_v10 = vpop.xlane.xlu0 %541 }
 0x10a   :  { %890 = vbcast.lane.b32.xlu0 %v860_v19, 312 }
 0x10c   :  { %831 = vbcast.lane.b32.xlu1 %v793_v52, 328  ;;  %v2502_v13 = vpop.xlane.xlu1 %550 }
 0x10d   :  { %v2504_v14 = vpop.xlane.xlu0 %547 }
 0x10e   :  { %894 = vbcast.lane.b32.xlu0 %v860_v19, 320 }
 0x110   :  { %835 = vbcast.lane.b32.xlu1 %v793_v52, 336  ;;  %v2506_v15 = vpop.xlane.xlu1 %556 }
 0x111   :  { %v2508_v56 = vpop.xlane.xlu0 %553 }
 0x112   :  { %898 = vbcast.lane.b32.xlu0 %v860_v19, 328 }
 0x114   :  { %839 = vbcast.lane.b32.xlu1 %v793_v52, 344  ;;  %v2510_v16 = vpop.xlane.xlu1 %562 }
 0x115   :  { %v2512_v20 = vpop.xlane.xlu0 %559 }
 0x116   :  { %902 = vbcast.lane.b32.xlu0 %v860_v19, 336 }
 0x118   :  { %843 = vbcast.lane.b32.xlu1 %v793_v52, 352  ;;  %v2514_v30 = vpop.xlane.xlu1 %568 }
 0x119   :  { %3086 = vst [vmem:[#allocation23_spill] sm:$0xff] %v2514_v30  ;;  %v2516_v33 = vpop.xlane.xlu0 %565 }
 0x11a   :  { %906 = vbcast.lane.b32.xlu0 %v860_v19, 344 }
 0x11c   :  { %847 = vbcast.lane.b32.xlu1 %v793_v52, 360  ;;  %v2518_v49 = vpop.xlane.xlu1 %574 }
 0x11d   :  { %3087 = vst [vmem:[#allocation24_spill] sm:$0xff] %v2518_v49  ;;  %v2520_v11 = vpop.xlane.xlu0 %571 }
 0x11e   :  { %3088 = vst [vmem:[#allocation25_spill] sm:$0xff] %v2520_v11  ;;  %910 = vbcast.lane.b32.xlu0 %v860_v19, 352  ;;  %v592_v11 = vadd.f32 %v2533_v50, %v2396_v18 }
 0x120   :  { %851 = vbcast.lane.b32.xlu1 %v793_v52, 368  ;;  %v2522_v0 = vpop.xlane.xlu1 %580 }
 0x121   :  { %3089 = vst [vmem:[#allocation26_spill] sm:$0xff] %v2522_v0  ;;  %v2524_v6 = vpop.xlane.xlu0 %577  ;;  %v590_v0 = vadd.f32 %v2533_v50, %v2398_v39 }
 0x122   :  { %3090 = vst [vmem:[#allocation27_spill] sm:$0xff] %v2524_v6  ;;  %914 = vbcast.lane.b32.xlu0 %v860_v19, 360 }
 0x124   :  { %855 = vbcast.lane.b32.xlu1 %v793_v52, 376  ;;  %v2526_v7 = vpop.xlane.xlu1 %586 }
 0x125   :  { %3091 = vst [vmem:[#allocation28_spill] sm:$0xff] %v2526_v7  ;;  %v2528_v31 = vpop.xlane.xlu0 %583 }
 0x126   :  { %3092 = vst [vmem:[#allocation29_spill] sm:$0xff] %v2528_v31  ;;  %918 = vbcast.lane.b32.xlu0 %v860_v19, 368 }
 0x128   :  { %922 = vbcast.lane.b32.xlu1 %v860_v19, 376  ;;  %v666_v6 = vpop.permute.xlu1 %665 }
 0x129   :  { %v989_v32 = vadd.f32 %v666_v6, %v591_v4  ;;  %v662_v52 = vpop.permute.xlu0 %661 }
 0x12a   :  { %v988_v51 = vadd.f32 %v662_v52, %v590_v0 }
 0x12c   :  { %1118 = vperm.xlu0 %1868, %v988_v51   ;;  %v670_v7 = vpop.permute.xlu1 %669  ;;  %1121 = vperm.xlu1 %1869, %v989_v32   ;;  %v606_v51 = vadd.f32 %v2533_v50, %v2432_v35  ;;  %v608_v35 = vadd.f32 %v2533_v50, %v2436_v37 }
 0x12d   :  { %v2539_v31 = vpop.permute.xlu0 %677  ;;  %v990_v2 = vadd.f32 %v670_v7, %v592_v11 }
 0x130   :  { %v674_v5 = vpop.permute.xlu1 %673 }
 0x131   :  { %v2541_v49 = vpop.permute.xlu0 %685 }
 0x134   :  { %v2543_v28 = vpop.permute.xlu1 %681 }
 0x135   :  { %v2545_v47 = vpop.permute.xlu0 %693 }
 0x138   :  { %v2547_v22 = vpop.permute.xlu1 %689 }
 0x139   :  { %v2549_v39 = vpop.permute.xlu0 %701 }
 0x13c   :  { %v2551_v19 = vpop.permute.xlu1 %697 }
 0x13d   :  { %v2553_v4 = vpop.permute.xlu0 %709 }
 0x13e   :  { %3093 = vst [vmem:[#allocation30_spill] sm:$0xff] %v2553_v4  ;;  %v607_v4 = vadd.f32 %v2533_v50, %v2430_v34 }
 0x140   :  { %v2555_v0 = vpop.permute.xlu1 %705 }
 0x141   :  { %3094 = vst [vmem:[#allocation31_spill] sm:$0xff] %v2555_v0  ;;  %v2557_v32 = vpop.permute.xlu0 %717 }
 0x142   :  { %3095 = vst [vmem:[#allocation32_spill] sm:$0xff] %v2557_v32 }
 0x144   :  { %v2561_v6 = vpop.permute.xlu1 %713 }
 0x145   :  { %3096 = vst [vmem:[#allocation33_spill] sm:$0xff] %v2561_v6  ;;  %v729_v52 = vpop.permute.xlu0 %728 }
 0x146   :  { %v1004_v1 = vadd.f32 %v729_v52, %v606_v51 }
 0x148   :  { %1166 = vperm.xlu1 %1869, %v1004_v1   ;;  %v2565_v29 = vpop.permute.xlu1 %721 }
 0x149   :  { %3097 = vst [vmem:[#allocation34_spill] sm:$0xff] %v2565_v29  ;;  %v737_v48 = vpop.permute.xlu0 %736 }
 0x14a   :  { %v1006_v52 = vadd.f32 %v737_v48, %v608_v35  ;;  %v622_v48 = vadd.f32 %v2533_v50, %v2467_v54 }
 0x14c   :  { %1124 = vperm.xlu1 %1869, %v990_v2   ;;  %v733_v32 = vpop.permute.xlu1 %732 }
 0x14d   :  { %v1005_v0 = vadd.f32 %v733_v32, %v607_v4  ;;  %v745_v30 = vpop.permute.xlu0 %744 }
 0x14f   :  { %1169 = vperm.xlu0 %1868, %v1005_v0  }
 0x150   :  { %v741_v51 = vpop.permute.xlu1 %740 }
 0x151   :  { %v2571_v6 = vpop.permute.xlu0 %752 }
 0x153   :  { %1172 = vperm.xlu0 %1868, %v1006_v52   ;;  %v593_v52 = vadd.f32 %v2533_v50, %v2400_v21  ;;  %v639_v21 = vadd.f32 %v2533_v50, %v2498_v8  ;;  %v594_v8 = vadd.f32 %v2533_v50, %v2406_v24 }
 0x154   :  { %v749_v18 = vpop.permute.xlu1 %748 }
 0x155   :  { %v2573_v1 = vpop.permute.xlu0 %760  ;;  %v991_v45 = vadd.f32 %v674_v5, %v593_v52 }
 0x158   :  { %v2575_v7 = vpop.permute.xlu1 %756 }
 0x159   :  { %v2577_v11 = vpop.permute.xlu0 %768 }
 0x15c   :  { %v2579_v34 = vpop.permute.xlu1 %764 }
 0x15d   :  { %v2581_v2 = vpop.permute.xlu0 %776 }
 0x15e   :  { %3098 = vst [vmem:[#allocation35_spill] sm:$0xff] %v2581_v2  ;;  %v623_v2 = vadd.f32 %v2533_v50, %v2464_v53 }
 0x160   :  { %v2583_v4 = vpop.permute.xlu1 %772 }
 0x161   :  { %3099 = vst [vmem:[#allocation36_spill] sm:$0xff] %v2583_v4  ;;  %v2585_v37 = vpop.permute.xlu0 %784 }
 0x162   :  { %3100 = vst [vmem:[#allocation37_spill] sm:$0xff] %v2585_v37  ;;  %v624_v37 = vadd.f32 %v2533_v50, %v2472_v57  ;;  %v638_v57 = vadd.f32 %v2533_v50, %v2500_v10  ;;  %v992_v10 = vadd.f32 %v2539_v31, %v594_v8  ;;  %v641_v31 = vadd.f32 %v2533_v50, %v2502_v13 }
 0x163   :  { %v596_v13 = vadd.f32 %v2533_v50, %v2410_v25  ;;  %v643_v8 = vadd.f32 %v2533_v50, %v2506_v15 }
 0x164   :  { %v2589_v0 = vpop.permute.xlu1 %780 }
 0x165   :  { %3101 = vst [vmem:[#allocation38_spill] sm:$0xff] %v2589_v0  ;;  %v796_v32 = vpop.permute.xlu0 %795 }
 0x166   :  { %v1020_v35 = vadd.f32 %v796_v32, %v622_v48  ;;  %v609_v48 = vadd.f32 %v2533_v50, %v2434_v36 }
 0x168   :  { %1214 = vperm.xlu1 %1869, %v1020_v35   ;;  %v2593_v29 = vpop.permute.xlu1 %788  ;;  %v1007_v32 = vadd.f32 %v741_v51, %v609_v48 }
 0x169   :  { %v804_v17 = vpop.permute.xlu0 %803 }
 0x16a   :  { %v1022_v62 = vadd.f32 %v804_v17, %v624_v37 }
 0x16c   :  { %1127 = vperm.xlu1 %1869, %v991_v45   ;;  %v800_v54 = vpop.permute.xlu1 %799  ;;  %v610_v45 = vadd.f32 %v2533_v50, %v2440_v40  ;;  %v625_v40 = vadd.f32 %v2533_v50, %v2469_v55 }
 0x16d   :  { %v1021_v4 = vadd.f32 %v800_v54, %v623_v2  ;;  %v867_v0 = vpop.permute.xlu0 %866 }
 0x16e   :  { %v1037_v53 = vadd.f32 %v867_v0, %v639_v21 }
 0x16f   :  { %1217 = vperm.xlu0 %1868, %v1021_v4   ;;  %v1008_v4 = vadd.f32 %v745_v30, %v610_v45  ;;  %v611_v30 = vadd.f32 %v2533_v50, %v2438_v38  ;;  %v626_v38 = vadd.f32 %v2533_v50, %v2476_v59  ;;  %v994_v59 = vadd.f32 %v2541_v49, %v596_v13 }
 0x170   :  { %1220 = vperm.xlu1 %1869, %v1022_v62   ;;  %v863_v5 = vpop.permute.xlu1 %862  ;;  %v640_v62 = vadd.f32 %v2533_v50, %v2504_v14  ;;  %v595_v14 = vadd.f32 %v2533_v50, %v2404_v23  ;;  %v597_v49 = vadd.f32 %v2533_v50, %v2408_v9 }
 0x171   :  { %v871_v35 = vpop.permute.xlu0 %870  ;;  %v1036_v2 = vadd.f32 %v863_v5, %v638_v57  ;;  %v1009_v48 = vadd.f32 %v749_v18, %v611_v30  ;;  %v612_v18 = vadd.f32 %v2533_v50, %v2444_v42 }
 0x172   :  { %v1038_v0 = vadd.f32 %v871_v35, %v640_v62  ;;  %v993_v55 = vadd.f32 %v2543_v28, %v595_v14  ;;  %v642_v28 = vadd.f32 %v2533_v50, %v2508_v56 }
 0x173   :  { %1175 = vperm.xlu0 %1868, %v1007_v32   ;;  %v1010_v57 = vadd.f32 %v2571_v6, %v612_v18  ;;  %v613_v6 = vadd.f32 %v2533_v50, %v2442_v41  ;;  %v995_v41 = vadd.f32 %v2547_v22, %v597_v49  ;;  %v598_v22 = vadd.f32 %v2533_v50, %v2414_v26  ;;  %v3107_v49 = vld [vmem:[#allocation23_spill] sm:$0xff] }
 0x174   :  { %1265 = vperm.xlu1 %1869, %v1037_v53   ;;  %v808_v17 = vpop.permute.xlu1 %807 }
 0x175   :  { %v875_v36 = vpop.permute.xlu0 %874  ;;  %v1023_v24 = vadd.f32 %v808_v17, %v625_v40  ;;  %v1011_v56 = vadd.f32 %v2575_v7, %v613_v6  ;;  %v614_v7 = vadd.f32 %v2533_v50, %v2448_v44  ;;  %v644_v40 = vadd.f32 %v2533_v50, %v2512_v20 }
 0x176   :  { %v1039_v32 = vadd.f32 %v875_v36, %v641_v31  ;;  %v996_v44 = vadd.f32 %v2545_v47, %v598_v22  ;;  %v645_v47 = vadd.f32 %v2533_v50, %v2510_v16 }
 0x177   :  { %1262 = vperm.xlu0 %1868, %v1036_v2   ;;  %v627_v2 = vadd.f32 %v2533_v50, %v2474_v58 }
 0x178   :  { %1178 = vperm.xlu1 %1869, %v1008_v4   ;;  %v812_v51 = vpop.permute.xlu1 %811 }
 0x179   :  { %v879_v37 = vpop.permute.xlu0 %878  ;;  %v1024_v23 = vadd.f32 %v812_v51, %v626_v38  ;;  %v600_v38 = vadd.f32 %v2533_v50, %v2418_v27 }
 0x17a   :  { %v1040_v42 = vadd.f32 %v879_v37, %v642_v28 }
 0x17b   :  { %1130 = vperm.xlu0 %1868, %v992_v10   ;;  %v628_v10 = vadd.f32 %v2533_v50, %v2480_v61 }
 0x17c   :  { %1268 = vperm.xlu1 %1869, %v1038_v0   ;;  %v816_v52 = vpop.permute.xlu1 %815  ;;  %v1012_v0 = vadd.f32 %v2573_v1, %v614_v7  ;;  %v615_v1 = vadd.f32 %v2533_v50, %v2446_v43  ;;  %v3102_v43 = vlaneseq }
 0x17d   :  { %v883_v54 = vpop.permute.xlu0 %882  ;;  %v1025_v36 = vadd.f32 %v816_v52, %v627_v2  ;;  %v629_v52 = vadd.f32 %v2533_v50, %v2478_v60  ;;  %v3105_v2 = vld [vmem:[#allocation36_spill] sm:$0xff] }
 0x17e   :  { %v1041_v51 = vadd.f32 %v883_v54, %v643_v8  ;;  %v1013_v20 = vadd.f32 %v2579_v34, %v615_v1  ;;  %v630_v34 = vadd.f32 %v2533_v50, %v2484_v63  ;;  %v646_v63 = vadd.f32 %v2533_v50, %v2516_v33  ;;  %v3104_v33 = vld [vmem:[#allocation11_spill] sm:$0xff]  ;;  %v3113_v1 = vld [vmem:[#allocation25_spill] sm:$0xff] }
 0x17f   :  { %1223 = vperm.xlu0 %1868, %v1023_v24   ;;  %v617_v28 = vadd.f32 %v2533_v50, %v3104_v33  ;;  %v647_v8 = vadd.f32 %v2533_v50, %v3107_v49 }
 0x180   :  { %1181 = vperm.xlu1 %1869, %v1009_v48   ;;  %v820_v21 = vpop.permute.xlu1 %819  ;;  %v599_v48 = vadd.f32 %v2533_v50, %v2412_v46  ;;  %v616_v46 = vadd.f32 %v2533_v50, %v2452_v12  ;;  %v998_v12 = vadd.f32 %v2549_v39, %v600_v38 }
 0x181   :  { %v887_v5 = vpop.permute.xlu0 %886  ;;  %v1026_v37 = vadd.f32 %v820_v21, %v628_v10  ;;  %v2686_v21 = vand.u32 127, %v3102_v43  ;;  %v1015_v6 = vadd.f32 %v3105_v2, %v617_v28  ;;  %v3109_v10 = vld [vmem:[#allocation18_spill] sm:$0xff]  ;;  %v3116_v43 = vld [vmem:[#allocation12_spill] sm:$0xff]  ;;  %v3123_v28 = vld [vmem:[#allocation37_spill] sm:$0xff] }
 0x182   :  { %v1042_v30 = vadd.f32 %v887_v5, %v644_v40  ;;  %v997_v14 = vadd.f32 %v2551_v19, %v599_v48  ;;  %v1014_v19 = vadd.f32 %v2577_v11, %v616_v46  ;;  %v632_v7 = vadd.f32 %v2533_v50, %v3109_v10  ;;  %v3111_v40 = vld [vmem:[#allocation35_spill] sm:$0xff] }
 0x183   :  { %1133 = vperm.xlu0 %1868, %v993_v55  }
 0x184   :  { %1271 = vperm.xlu1 %1869, %v1039_v32   ;;  %v824_v35 = vpop.permute.xlu1 %823  ;;  %v1315_v32 = vadd.s32 4294967288, %v2686_v21 }
 0x185   :  { %v891_v53 = vpop.permute.xlu0 %890  ;;  %v1027_v54 = vadd.f32 %v824_v35, %v629_v52 }
 0x186   :  { %v1043_v55 = vadd.f32 %v891_v53, %v645_v47  ;;  %v2710_v11 = vsub.s32 %v1315_v32, %v2060_v3  ;;  %v3103_v53 = vld [vmem:[#allocation16_spill] sm:$0xff]  ;;  %v3115_v47 = vld [vmem:[#allocation17_spill] sm:$0xff] }
 0x187   :  { %1226 = vperm.xlu0 %1868, %v1024_v23   ;;  %v2707_v23 = vsub.s32 %v2686_v21, %v2060_v3 }
 0x188   :  { %1184 = vperm.xlu1 %1869, %v1010_v57   ;;  %v828_v45 = vpop.permute.xlu1 %827  ;;  %v631_v57 = vadd.f32 %v2533_v50, %v3103_v53 }
 0x189   :  { %v2631_v17 = vpop.permute.xlu0 %894  ;;  %v1028_v5 = vadd.f32 %v828_v45, %v630_v34  ;;  %v3117_v34 = vld [vmem:[#allocation38_spill] sm:$0xff] }
 0x18a   :  { %v1044_v27 = vadd.f32 %v2631_v17, %v646_v63  ;;  %v3106_v17 = vld [vmem:[#allocation6_spill] sm:$0xff] }
 0x18b   :  { %1136 = vperm.xlu0 %1868, %v994_v59  }
 0x18c   :  { %1274 = vperm.xlu1 %1869, %v1040_v42   ;;  %v2637_v25 = vpop.permute.xlu1 %831 }
 0x18d   :  { %v2639_v4 = vpop.permute.xlu0 %898  ;;  %v1029_v45 = vadd.f32 %v2637_v25, %v631_v57  ;;  %v3122_v57 = vld [vmem:[#allocation15_spill] sm:$0xff] }
 0x18e   :  { %v1045_v25 = vadd.f32 %v2639_v4, %v647_v8  ;;  %v3114_v4 = vld [vmem:[#allocation30_spill] sm:$0xff]  ;;  %v3127_v8 = vld [vmem:[#allocation19_spill] sm:$0xff] }
 0x18f   :  { %1229 = vperm.xlu0 %1868, %v1025_v36   ;;  %v601_v36 = vadd.f32 %v2533_v50, %v3106_v17  ;;  %v3126_v17 = vld [vmem:[#allocation32_spill] sm:$0xff] }
 0x190   :  { %1187 = vperm.xlu1 %1869, %v1011_v56   ;;  %v2646_v58 = vpop.permute.xlu1 %835 }
 0x191   :  { %v2649_v62 = vpop.permute.xlu0 %902  ;;  %v1030_v22 = vadd.f32 %v2646_v58, %v632_v7  ;;  %v619_v58 = vadd.f32 %v2533_v50, %v3116_v43 }
 0x193   :  { %1139 = vperm.xlu0 %1868, %v995_v41   ;;  %v3108_v41 = vld [vmem:[#allocation31_spill] sm:$0xff]  ;;  %v1017_v46 = vadd.f32 %v3117_v34, %v619_v58 }
 0x194   :  { %1277 = vperm.xlu1 %1869, %v1041_v51   ;;  %v2655_v9 = vpop.permute.xlu1 %839  ;;  %v999_v51 = vadd.f32 %v3108_v41, %v601_v36 }
 0x195   :  { %v2657_v15 = vpop.permute.xlu0 %906 }
 0x197   :  { %1232 = vperm.xlu0 %1868, %v1026_v37   ;;  %v3110_v37 = vld [vmem:[#allocation13_spill] sm:$0xff] }
 0x198   :  { %1190 = vperm.xlu1 %1869, %v1012_v0   ;;  %v2664_v61 = vpop.permute.xlu1 %843  ;;  %v618_v0 = vadd.f32 %v2533_v50, %v3110_v37 }
 0x199   :  { %v2669_v24 = vpop.permute.xlu0 %910 }
 0x19b   :  { %1142 = vperm.xlu0 %1868, %v996_v44   ;;  %v1016_v44 = vadd.f32 %v3111_v40, %v618_v0 }
 0x19c   :  { %1280 = vperm.xlu1 %1869, %v1042_v30   ;;  %v2673_v26 = vpop.permute.xlu1 %847  ;;  %v3112_v30 = vld [vmem:[#allocation8_spill] sm:$0xff] }
 0x19d   :  { %v2683_v31 = vpop.permute.xlu0 %914  ;;  %v602_v52 = vadd.f32 %v2533_v50, %v3112_v30 }
 0x19f   :  { %1235 = vperm.xlu0 %1868, %v1027_v54   ;;  %v648_v54 = vadd.f32 %v2533_v50, %v3113_v1 }
 0x1a0   :  { %1193 = vperm.xlu1 %1869, %v1013_v20   ;;  %v2680_v60 = vpop.permute.xlu1 %851  ;;  %v1000_v20 = vadd.f32 %v3114_v4, %v602_v52  ;;  %v3130_v52 = vld [vmem:[#allocation26_spill] sm:$0xff] }
 0x1a1   :  { %v2698_v18 = vpop.permute.xlu0 %918  ;;  %v1046_v48 = vadd.f32 %v2649_v62, %v648_v54  ;;  %v3120_v62 = vld [vmem:[#allocation33_spill] sm:$0xff]  ;;  %v651_v1 = vadd.f32 %v2533_v50, %v3130_v52  ;;  %v3131_v54 = vld [vmem:[#allocation34_spill] sm:$0xff] }
 0x1a3   :  { %1145 = vperm.xlu0 %1868, %v997_v14   ;;  %v633_v14 = vadd.f32 %v2533_v50, %v3115_v47 }
 0x1a4   :  { %1283 = vperm.xlu1 %1869, %v1043_v55   ;;  %v2692_v16 = vpop.permute.xlu1 %855 }
 0x1a5   :  { %v1031_v55 = vadd.f32 %v2655_v9, %v633_v14  ;;  %v620_v9 = vadd.f32 %v2533_v50, %v3122_v57  ;;  %v3133_v14 = vld [vmem:[#allocation29_spill] sm:$0xff] }
 0x1a6   :  { %v652_v43 = vadd.f32 %v2533_v50, %v3133_v14 }
 0x1a7   :  { %1238 = vperm.xlu0 %1868, %v1028_v5   ;;  %v3118_v5 = vld [vmem:[#allocation7_spill] sm:$0xff] }
 0x1a8   :  { %1196 = vperm.xlu1 %1869, %v1014_v19   ;;  %v2702_v35 = vpop.permute.xlu1 %922  ;;  %v603_v32 = vadd.f32 %v2533_v50, %v3118_v5  ;;  %v3119_v19 = vld [vmem:[#allocation24_spill] sm:$0xff]  ;;  %v1050_v34 = vadd.f32 %v2698_v18, %v652_v43 }
 0x1a9   :  { %v649_v38 = vadd.f32 %v2533_v50, %v3119_v19 }
 0x1aa   :  { %v1001_v63 = vadd.f32 %v3120_v62, %v603_v32  ;;  %v3135_v32 = vld [vmem:[#allocation28_spill] sm:$0xff] }
 0x1ab   :  { %v1119_v13 = vpop.permute.xlu0 %1118  ;;  %1148 = vperm.xlu0 %1868, %v998_v12   ;;  %v1047_v12 = vadd.f32 %v2657_v15, %v649_v38  ;;  %v3125_v15 = vld [vmem:[#allocation27_spill] sm:$0xff]  ;;  %v653_v19 = vadd.f32 %v2533_v50, %v3135_v32  ;;  %v1357_v32 = vadd.s32 4294967240, %v2686_v21 }
 0x1ac   :  { %1286 = vperm.xlu1 %1869, %v1044_v27   ;;  %v1122_v39 = vpop.permute.xlu1 %1121  ;;  %v1314_v59 = vrot.slane %v1119_v13, %v2707_v23  ;;  %v3121_v27 = vld [vmem:[#allocation20_spill] sm:$0xff]  ;;  %v1322_v13 = vadd.s32 4294967280, %v2686_v21  ;;  %v650_v2 = vadd.f32 %v2533_v50, %v3125_v15 }
 0x1ad   :  { %v1319_v42 = vrot.slane %v1122_v39, %v2710_v11  ;;  %v634_v53 = vadd.f32 %v2533_v50, %v3121_v27  ;;  %v1018_v39 = vadd.f32 %v3123_v28, %v620_v9  ;;  %v1051_v38 = vadd.f32 %v2702_v35, %v653_v19 }
 0x1ae   :  { %v1048_v49 = vadd.f32 %v2669_v24, %v650_v2  ;;  %v3129_v24 = vld [vmem:[#allocation9_spill] sm:$0xff]  ;;  %v1336_v35 = vadd.s32 4294967264, %v2686_v21 }
 0x1af   :  { %v1321_v56 = vsel %vm1320_vm1, %v1319_v42, %v1314_v59  ;;  %1241 = vperm.xlu0 %1868, %v1029_v45   ;;  %v1032_v33 = vadd.f32 %v2664_v61, %v634_v53  ;;  %v3124_v45 = vld [vmem:[#allocation10_spill] sm:$0xff]  ;;  %v635_v61 = vadd.f32 %v2533_v50, %v3127_v8  ;;  %v605_v40 = vadd.f32 %v2533_v50, %v3129_v24 }
 0x1b0   :  { %1199 = vperm.xlu1 %1869, %v1015_v6   ;;  %v604_v59 = vadd.f32 %v2533_v50, %v3124_v45  ;;  %v2764_v6 = vsub.s32 %v1322_v13, %v2060_v3  ;;  %v1343_v8 = vadd.s32 4294967256, %v2686_v21 }
 0x1b1   :  { %v1033_v7 = vadd.f32 %v2673_v26, %v635_v61  ;;  %v1003_v4 = vadd.f32 %v3131_v54, %v605_v40 }
 0x1b2   :  { %v1002_v36 = vadd.f32 %v3126_v17, %v604_v59  ;;  %v1339_v59 = vsub.s32 %v1336_v35, %v2060_v3 }
 0x1b3   :  { %1151 = vperm.xlu0 %1868, %v999_v51   ;;  %v3128_v51 = vld [vmem:[#allocation14_spill] sm:$0xff] }
 0x1b4   :  { %1289 = vperm.xlu1 %1869, %v1045_v25   ;;  %v621_v25 = vadd.f32 %v2533_v50, %v3128_v51 }
 0x1b6   :  { %v1019_v37 = vadd.f32 %v2593_v29, %v621_v25  ;;  %v1049_v29 = vadd.f32 %v2683_v31, %v651_v1 }
 0x1b7   :  { %1244 = vperm.xlu0 %1868, %v1030_v22  }
 0x1b8   :  { %1202 = vperm.xlu1 %1869, %v1016_v44  }
 0x1bb   :  { %1154 = vperm.xlu0 %1868, %v1000_v20   ;;  %v3132_v20 = vld [vmem:[#allocation22_spill] sm:$0xff] }
 0x1bc   :  { %1292 = vperm.xlu1 %1869, %v1046_v48   ;;  %v636_v48 = vadd.f32 %v2533_v50, %v3132_v20 }
 0x1be   :  { %v1034_v58 = vadd.f32 %v2680_v60, %v636_v48  ;;  %v1329_v60 = vadd.s32 4294967272, %v2686_v21 }
 0x1bf   :  { %1247 = vperm.xlu0 %1868, %v1031_v55  }
 0x1c0   :  { %1205 = vperm.xlu1 %1869, %v1017_v46   ;;  %v3134_v46 = vld [vmem:[#allocation21_spill] sm:$0xff] }
 0x1c1   :  { %v637_v31 = vadd.f32 %v2533_v50, %v3134_v46 }
 0x1c3   :  { %1157 = vperm.xlu0 %1868, %v1001_v63   ;;  %v1035_v5 = vadd.f32 %v2692_v16, %v637_v31  ;;  %v1332_v63 = vsub.s32 %v1329_v60, %v2060_v3 }
 0x1c4   :  { %1295 = vperm.xlu1 %1869, %v1047_v12  }
 0x1c7   :  { %v1167_v42 = vpop.permute.xlu1 %1166  ;;  %1250 = vperm.xlu0 %1868, %v1032_v33  }
 0x1c8   :  { %1208 = vperm.xlu1 %1869, %v1018_v39   ;;  %v1423_v44 = vrot.slane %v1167_v42, %v2707_v23 }
 0x1cb   :  { %v1125_v41 = vpop.permute.xlu1 %1124  ;;  %1160 = vperm.xlu0 %1868, %v1002_v36  }
 0x1cc   :  { %v1326_v10 = vrot.slane %v1125_v41, %v2764_v6  ;;  %1298 = vperm.xlu1 %1869, %v1048_v49  }
 0x1ce   :  { %v1328_v0 = vsel %vm1327_vm2, %v1326_v10, %v1321_v56  ;;  %v1170_v22 = vpop.permute.xlu0 %1169 }
 0x1cf   :  { %v1427_v30 = vrot.slane %v1170_v22, %v2710_v11  ;;  %1253 = vperm.xlu0 %1868, %v1033_v7  }
 0x1d0   :  { %1211 = vperm.xlu1 %1869, %v1019_v37   ;;  %v2817_v37 = vsub.s32 %v1343_v8, %v2060_v3 }
 0x1d1   :  { %v1428_v26 = vsel %vm1320_vm1, %v1427_v30, %v1423_v44  ;;  %v1350_v44 = vadd.s32 4294967248, %v2686_v21 }
 0x1d2   :  { %v1173_v56 = vpop.permute.xlu0 %1172 }
 0x1d3   :  { %v1432_v47 = vrot.slane %v1173_v56, %v2764_v6  ;;  %1163 = vperm.xlu0 %1868, %v1003_v4  }
 0x1d4   :  { %1301 = vperm.xlu1 %1869, %v1049_v29  }
 0x1d5   :  { %v1433_v55 = vsel %vm1327_vm2, %v1432_v47, %v1428_v26  ;;  %v2827_v26 = vsub.s32 %v1350_v44, %v2060_v3 }
 0x1d7   :  { %1256 = vperm.xlu0 %1868, %v1034_v58  }
 0x1d8   :  { %1304 = vperm.xlu1 %1869, %v1050_v34  }
 0x1db   :  { %1259 = vperm.xlu0 %1868, %v1035_v5  }
 0x1df   :  { %1307 = vperm.xlu0 %1868, %v1051_v38  }
 0x1e7   :  { %v1215_v62 = vpop.permute.xlu1 %1214 }
 0x1e8   :  { %v1502_v16 = vrot.slane %v1215_v62, %v2707_v23 }
 0x1eb   :  { %v1128_v18 = vpop.permute.xlu1 %1127 }
 0x1ec   :  { %v1333_v12 = vrot.slane %v1128_v18, %v1332_v63 }
 0x1ee   :  { %v1335_v27 = vsel %vm1334_vm3, %v1333_v12, %v1328_v0  ;;  %v1218_v53 = vpop.permute.xlu0 %1217 }
 0x1ef   :  { %v1221_v57 = vpop.permute.xlu1 %1220  ;;  %v1506_v50 = vrot.slane %v1218_v53, %v2710_v11 }
 0x1f0   :  { %v1511_v9 = vrot.slane %v1221_v57, %v2764_v6 }
 0x1f1   :  { %v1507_v13 = vsel %vm1320_vm1, %v1506_v50, %v1502_v16 }
 0x1f2   :  { %v1176_v33 = vpop.permute.xlu0 %1175  ;;  %v1512_v28 = vsel %vm1327_vm2, %v1511_v9, %v1507_v13 }
 0x1f3   :  { %v1266_v39 = vpop.permute.xlu1 %1265  ;;  %v1437_v45 = vrot.slane %v1176_v33, %v1332_v63 }
 0x1f4   :  { %v1585_v2 = vrot.slane %v1266_v39, %v2710_v11 }
 0x1f5   :  { %v1438_v42 = vsel %vm1334_vm3, %v1437_v45, %v1433_v55 }
 0x1f6   :  { %v1263_v15 = vpop.permute.xlu0 %1262 }
 0x1f7   :  { %v1179_v17 = vpop.permute.xlu1 %1178  ;;  %v1581_v36 = vrot.slane %v1263_v15, %v2707_v23 }
 0x1f8   :  { %v1442_v49 = vrot.slane %v1179_v17, %v1339_v59 }
 0x1f9   :  { %v1586_v61 = vsel %vm1320_vm1, %v1585_v2, %v1581_v36  ;;  %vm1659_vm1 = vcmask 1042434  }
 0x1fa   :  { %v1443_v41 = vsel %vm1341_vm4, %v1442_v49, %v1438_v42  ;;  %v1131_v51 = vpop.permute.xlu0 %1130 }
 0x1fb   :  { %v1269_v25 = vpop.permute.xlu1 %1268  ;;  %v1340_v10 = vrot.slane %v1131_v51, %v1339_v59 }
 0x1fc   :  { %v1590_v7 = vrot.slane %v1269_v25, %v2764_v6 }
 0x1fd   :  { %v1342_v11 = vsel %vm1341_vm4, %v1340_v10, %v1335_v27 }
 0x1fe   :  { %v1591_v0 = vsel %vm1327_vm2, %v1590_v7, %v1586_v61  ;;  %v1224_v23 = vpop.permute.xlu0 %1223  ;;  %v1364_v7 = vadd.s32 4294967232, %v2686_v21  ;;  %vm1661_vm2 = vcmask 1043459  }
 0x1ff   :  { %v1182_v22 = vpop.permute.xlu1 %1181  ;;  %v1516_v24 = vrot.slane %v1224_v23, %v1332_v63  ;;  %v1378_v23 = vadd.s32 4294967216, %v2686_v21 }
 0x200   :  { %v1447_v40 = vrot.slane %v1182_v22, %v2817_v37  ;;  %v2911_v44 = vsub.s32 %v1364_v7, %v2060_v3 }
 0x201   :  { %v1517_v30 = vsel %vm1334_vm3, %v1516_v24, %v1512_v28  ;;  %v1385_v24 = vadd.s32 4294967208, %v2686_v21 }
 0x202   :  { %v1448_v52 = vsel %vm1348_vm5, %v1447_v40, %v1443_v41  ;;  %v1134_v6 = vpop.permute.xlu0 %1133  ;;  %v1392_v40 = vadd.s32 4294967200, %v2686_v21 }
 0x203   :  { %v1272_v1 = vpop.permute.xlu1 %1271  ;;  %v1347_v54 = vrot.slane %v1134_v6, %v2817_v37 }
 0x204   :  { %v1595_v4 = vrot.slane %v1272_v1, %v1332_v63  ;;  %v2846_v63 = vsub.s32 %v1357_v32, %v2060_v3  ;;  %v1413_v1 = vadd.s32 4294967176, %v2686_v21 }
 0x205   :  { %v1349_v29 = vsel %vm1348_vm5, %v1347_v54, %v1342_v11 }
 0x206   :  { %v1596_v56 = vsel %vm1334_vm3, %v1595_v4, %v1591_v0  ;;  %v1227_v20 = vpop.permute.xlu0 %1226  ;;  %v1371_v0 = vadd.s32 4294967224, %v2686_v21  ;;  %v2922_v4 = vsub.s32 %v1378_v23, %v2060_v3  ;;  %vm1673_vm3 = vcmask 1043456  }
 0x207   :  { %v1185_v48 = vpop.permute.xlu1 %1184  ;;  %v1521_v47 = vrot.slane %v1227_v20, %v1339_v59  ;;  %v2927_v20 = vsub.s32 %v1385_v24, %v2060_v3 }
 0x208   :  { %v1452_v14 = vrot.slane %v1185_v48, %v2827_v26  ;;  %v2919_v54 = vsub.s32 %v1371_v0, %v2060_v3  ;;  %v2930_v48 = vsub.s32 %v1392_v40, %v2060_v3 }
 0x209   :  { %v1522_v43 = vsel %vm1341_vm4, %v1521_v47, %v1517_v30  ;;  %v1399_v30 = vadd.s32 4294967192, %v2686_v21 }
 0x20a   :  { %v2834_v58 = vsel %vm1355_vm6, %v1452_v14, %v1448_v52  ;;  %v1137_v55 = vpop.permute.xlu0 %1136  ;;  %v1406_v52 = vadd.s32 4294967184, %v2686_v21 }
 0x20b   :  { %v1275_v34 = vpop.permute.xlu1 %1274  ;;  %v1354_v46 = vrot.slane %v1137_v55, %v2827_v26  ;;  %v2935_v47 = vsub.s32 %v1399_v30, %v2060_v3 }
 0x20c   :  { %v1600_v31 = vrot.slane %v1275_v34, %v1339_v59  ;;  %v2943_v34 = vsub.s32 %v1413_v1, %v2060_v3 }
 0x20d   :  { %v1356_v5 = vsel %vm1355_vm6, %v1354_v46, %v1349_v29 }
 0x20e   :  { %v2840_v19 = vsel %vm1341_vm4, %v1600_v31, %v1596_v56  ;;  %v1230_v38 = vpop.permute.xlu0 %1229 }
 0x20f   :  { %v2842_v60 = vpop.permute.xlu1 %1187  ;;  %v1526_v62 = vrot.slane %v1230_v38, %v2817_v37 }
 0x210   :  { %v1457_v56 = vrot.slane %v2842_v60, %v2846_v63 }
 0x211   :  { %v2849_v18 = vsel %vm1348_vm5, %v1526_v62, %v1522_v43  ;;  %v2940_v43 = vsub.s32 %v1406_v52, %v2060_v3 }
 0x212   :  { %v1140_v12 = vpop.permute.xlu0 %1139  ;;  %v1458_v32 = vsel %vm1362_vm7, %v1457_v56, %v2834_v58 }
 0x213   :  { %v2851_v27 = vpop.permute.xlu1 %1277  ;;  %v1361_v53 = vrot.slane %v1140_v12, %v2846_v63 }
 0x214   :  { %v1605_v38 = vrot.slane %v2851_v27, %v2817_v37 }
 0x215   :  { %v2855_v16 = vsel %vm1362_vm7, %v1361_v53, %v1356_v5 }
 0x216   :  { %v2857_v57 = vpop.permute.xlu0 %1232 }
 0x217   :  { %v2859_v50 = vpop.permute.xlu1 %1190  ;;  %v1531_v12 = vrot.slane %v2857_v57, %v2827_v26 }
 0x218   :  { %v1462_v21 = vrot.slane %v2859_v50, %v2911_v44 }
 0x21a   :  { %v2861_v9 = vpop.permute.xlu0 %1142  ;;  %v1463_v62 = vsel %vm1369_vm8, %v1462_v21, %v1458_v32 }
 0x21b   :  { %v2863_v35 = vpop.permute.xlu1 %1280  ;;  %v1368_v14 = vrot.slane %v2861_v9, %v2911_v44 }
 0x21d   :  { %v1370_v37 = vsel %vm1369_vm8, %v1368_v14, %v2855_v16 }
 0x21e   :  { %v2865_v13 = vpop.permute.xlu0 %1235 }
 0x21f   :  { %v2867_v33 = vpop.permute.xlu1 %1193  ;;  %v1536_v27 = vrot.slane %v2865_v13, %v2846_v63 }
 0x220   :  { %v1467_v46 = vrot.slane %v2867_v33, %v2919_v54 }
 0x222   :  { %v2869_v28 = vpop.permute.xlu0 %1145  ;;  %v1468_v57 = vsel %vm1376_vm9, %v1467_v46, %v1463_v62 }
 0x223   :  { %v2871_v39 = vpop.permute.xlu1 %1283  ;;  %v1375_v31 = vrot.slane %v2869_v28, %v2919_v54 }
 0x224   :  { %v1615_v14 = vrot.slane %v2871_v39, %v2846_v63  ;;  %v1606_v63 = vsel %vm1348_vm5, %v1605_v38, %v2840_v19 }
 0x225   :  { %v1377_v28 = vsel %vm1376_vm9, %v1375_v31, %v1370_v37 }
 0x226   :  { %v2873_v45 = vpop.permute.xlu0 %1238 }
 0x227   :  { %v2875_v59 = vpop.permute.xlu1 %1196  ;;  %v1541_v23 = vrot.slane %v2873_v45, %v2911_v44 }
 0x228   :  { %v1472_v3 = vrot.slane %v2875_v59, %v2922_v4 }
 0x22a   :  { %v2877_v42 = vpop.permute.xlu0 %1148  ;;  %v1473_v13 = vsel %vm1383_vm10, %v1472_v3, %v1468_v57 }
 0x22b   :  { %v2879_v15 = vpop.permute.xlu1 %1286  ;;  %v1382_v60 = vrot.slane %v2877_v42, %v2922_v4 }
 0x22c   :  { %v1620_v32 = vrot.slane %v2879_v15, %v2911_v44 }
 0x22e   :  { %v2881_v2 = vpop.permute.xlu0 %1241 }
 0x22f   :  { %v2883_v17 = vpop.permute.xlu1 %1199 }
 0x230   :  { %v1477_v53 = vrot.slane %v2883_v17, %v2927_v20  ;;  %v1384_v17 = vsel %vm1383_vm10, %v1382_v60, %v1377_v28 }
 0x232   :  { %v2885_v36 = vpop.permute.xlu0 %1151  ;;  %v1478_v7 = vsel %vm1390_vm11, %v1477_v53, %v1473_v13 }
 0x233   :  { %v2887_v49 = vpop.permute.xlu1 %1289  ;;  %v1389_v58 = vrot.slane %v2885_v36, %v2927_v20 }
 0x235   :  { %v1391_v0 = vsel %vm1390_vm11, %v1389_v58, %v1384_v17 }
 0x236   :  { %v2889_v8 = vpop.permute.xlu0 %1244 }
 0x237   :  { %v2891_v61 = vpop.permute.xlu1 %1202 }
 0x238   :  { %v1482_v50 = vrot.slane %v2891_v61, %v2930_v48 }
 0x23a   :  { %v2893_v41 = vpop.permute.xlu0 %1154  ;;  %v1483_v24 = vsel %vm1397_vm12, %v1482_v50, %v1478_v7 }
 0x23b   :  { %v2895_v51 = vpop.permute.xlu1 %1292  ;;  %v1396_v9 = vrot.slane %v2893_v41, %v2930_v48  ;;  %v1532_v41 = vsel %vm1355_vm6, %v1531_v12, %v2849_v18  ;;  %v1546_v18 = vrot.slane %v2881_v2, %v2919_v54 }
 0x23c   :  { %v1630_v44 = vrot.slane %v2895_v51, %v2922_v4 }
 0x23d   :  { %v1398_v40 = vsel %vm1397_vm12, %v1396_v9, %v1391_v0 }
 0x23e   :  { %v2897_v25 = vpop.permute.xlu0 %1247 }
 0x23f   :  { %v2899_v10 = vpop.permute.xlu1 %1205  ;;  %v1556_v2 = vrot.slane %v2897_v25, %v2927_v20  ;;  %v1625_v25 = vrot.slane %v2887_v49, %v2919_v54 }
 0x240   :  { %v1487_v59 = vrot.slane %v2899_v10, %v2935_v47 }
 0x242   :  { %v2902_v11 = vpop.permute.xlu0 %1157  ;;  %v1488_v52 = vsel %vm1404_vm13, %v1487_v59, %v1483_v24 }
 0x243   :  { %v2906_v22 = vpop.permute.xlu1 %1295  ;;  %v1403_v16 = vrot.slane %v2902_v11, %v2935_v47  ;;  %v1610_v11 = vrot.slane %v2863_v35, %v2827_v26  ;;  %v1537_v26 = vsel %vm1362_vm7, %v1536_v27, %v1532_v41  ;;  %v1551_v35 = vrot.slane %v2889_v8, %v2922_v4 }
 0x244   :  { %v1542_v31 = vsel %vm1369_vm8, %v1541_v23, %v1537_v26  ;;  %v1635_v38 = vrot.slane %v2906_v22, %v2927_v20 }
 0x245   :  { %v1405_v1 = vsel %vm1404_vm13, %v1403_v16, %v1398_v40  ;;  %v1547_v39 = vsel %vm1376_vm9, %v1546_v18, %v1542_v31  ;;  %v1611_v12 = vsel %vm1355_vm6, %v1610_v11, %v1606_v63 }
 0x246   :  { %v2915_v6 = vpop.permute.xlu0 %1250  ;;  %v1552_v15 = vsel %vm1383_vm10, %v1551_v35, %v1547_v39  ;;  %v1616_v53 = vsel %vm1362_vm7, %v1615_v14, %v1611_v12 }
 0x247   :  { %v1209_v29 = vpop.permute.xlu1 %1208  ;;  %v1561_v8 = vrot.slane %v2915_v6, %v2930_v48  ;;  %v1557_v19 = vsel %vm1390_vm11, %v1556_v2, %v1552_v15  ;;  %v1621_v49 = vsel %vm1369_vm8, %v1620_v32, %v1616_v53 }
 0x248   :  { %v1492_v36 = vrot.slane %v1209_v29, %v2940_v43  ;;  %v1626_v51 = vsel %vm1376_vm9, %v1625_v25, %v1621_v49 }
 0x249   :  { %v1562_v54 = vsel %vm1397_vm12, %v1561_v8, %v1557_v19  ;;  %v1631_v22 = vsel %vm1383_vm10, %v1630_v44, %v1626_v51 }
 0x24a   :  { %v1161_v55 = vpop.permute.xlu0 %1160  ;;  %v1493_v45 = vsel %vm1411_vm14, %v1492_v36, %v1488_v52  ;;  %v1636_v57 = vsel %vm1390_vm11, %v1635_v38, %v1631_v22 }
 0x24b   :  { %v2949_v5 = vpop.permute.xlu1 %1298  ;;  %v1410_v61 = vrot.slane %v1161_v55, %v2940_v43 }
 0x24c   :  { %v1640_v37 = vrot.slane %v2949_v5, %v2930_v48 }
 0x24d   :  { %v1412_v21 = vsel %vm1411_vm14, %v1410_v61, %v1405_v1 }
 0x24e   :  { %v1254_v33 = vpop.permute.xlu0 %1253  ;;  %v1641_v5 = vsel %vm1397_vm12, %v1640_v37, %v1636_v57 }
 0x24f   :  { %v1212_v42 = vpop.permute.xlu1 %1211  ;;  %v1566_v62 = vrot.slane %v1254_v33, %v2935_v47 }
 0x250   :  { %v1497_v10 = vrot.slane %v1212_v42, %v2943_v34 }
 0x251   :  { %v1567_v4 = vsel %vm1404_vm13, %v1566_v62, %v1562_v54 }
 0x252   :  { %v1164_v30 = vpop.permute.xlu0 %1163  ;;  %v1498_v55 = vsel %vm1418_vm15, %v1497_v10, %v1493_v45 }
 0x253   :  { %v1302_v29 = vpop.permute.xlu1 %1301  ;;  %v1417_v56 = vrot.slane %v1164_v30, %v2943_v34 }
 0x254   :  { %v1645_v50 = vrot.slane %v1302_v29, %v2935_v47 }
 0x255   :  { %v1419_v46 = vsel %vm1418_vm15, %v1417_v56, %v1412_v21 }
 0x256   :  { %v1658_v3 = vsel %vm1657_vm0, %v1498_v55, %v1419_v46  ;;  %v1257_v60 = vpop.permute.xlu0 %1256  ;;  %v1646_v16 = vsel %vm1404_vm13, %v1645_v50, %v1641_v5 }
 0x257   :  { %v1571_v6 = vrot.slane %v1257_v60, %v2940_v43  ;;  %v1305_v58 = vpop.permute.xlu1 %1304 }
 0x258   :  { %v1650_v20 = vrot.slane %v1305_v58, %v2940_v43 }
 0x259   :  { %v1572_v33 = vsel %vm1411_vm14, %v1571_v6, %v1567_v4 }
 0x25a   :  { %v1260_v27 = vpop.permute.xlu0 %1259  ;;  %v1651_v42 = vsel %vm1411_vm14, %v1650_v20, %v1646_v16 }
 0x25b   :  { %v1576_v9 = vrot.slane %v1260_v27, %v2943_v34 }
 0x25d   :  { %v1577_v48 = vsel %vm1418_vm15, %v1576_v9, %v1572_v33 }
 0x25e   :  { %v1660_v28 = vsel %vm1659_vm1, %v1577_v48, %v1658_v3  ;;  %v1308_v59 = vpop.permute.xlu0 %1307 }
 0x25f   :  { %v1655_v47 = vrot.slane %v1308_v59, %v2943_v34 }
 0x261   :  { %v1656_v13 = vsel %vm1418_vm15, %v1655_v47, %v1651_v42 }
 0x262   :  { %v1662_v43 = vsel %vm1661_vm2, %v1656_v13, %v1660_v28 }
 0x263   :  { %1667 = vst [vmem:[#allocation3] sm:$0xf] %v1662_v43 }
 0x26a   :  { %v1672_v17 = vld [vmem:[#allocation3] sm:$0xf] }
 0x26b   :  { %v1674_v36 = vsel %vm1673_vm3, %v1672_v17, -inf }
 0x26c   :  { %1675 = vmax.xlane.f32.xlu1 %v1674_v36 }
 0x2f9   :  { %v1676_v61 = vpop.xlane.xlu1 %1675 }
 0x2fa   :  { %v1677_v41 = vsub.f32 %v1672_v17, %v1676_v61 }
 0x2fc   :  { %v1678_v7 = vmul.f32 1.442695, %v1677_v41 }
 0x2fe   :  { %1998 = vpow2.f32 %v1678_v7 }
 0x308   :  { %v1999_v0 = vpop.eup %1998 }
 0x309   :  { %v1680_v10 = vsel %vm1673_vm3, %v1999_v0, 0.0 }
 0x30a   :  { %1681 = vadd.xlane.f32.xlu0 %v1680_v10 }
 0x397   :  { %v1682_v11 = vpop.xlane.xlu0 %1681 }
 0x398   :  { %2000 = vrcp.f32 %v1682_v11 }
 0x3a2   :  { %v2001_v34 = vpop.eup %2000 }
 0x3a3   :  { %v1684_v23 = vmul.f32 %v2001_v34, %v1682_v11 }
 0x3a5   :  { %v1685_v24 = vsub.f32 2.0, %v1684_v23 }
 0x3a7   :  { %v1686_v40 = vmul.f32 %v2001_v34, %v1685_v24 }
 0x3a9   :  { %v1687_v30 = vmul.f32 %v1999_v0, %v1686_v40 }
 0x3ab   :  { %1688 = vst [vmem:[#allocation3] sm:$0xf] %v1687_v30 }
 0x3ac   :  { %2013 = shalt.err (!%p2010_p4)
}
 0x3ad   :  { %s2014_s3 = scalar_lea.hbm %s3067_s5, 64 }
 0x3ae   :  { %p2015_p5 = scmp.ne.s32.totalorder %s3067_s5, %s2014_s3  ;;  %p2018_p6 = scmp.lt.u32.totalorder %s2014_s3, %s3067_s5 }
 0x3b0   :  { %p2020_p7 = pnand %p2018_p6, %p2015_p5 }
 0x3b2   :  { %2023 = shalt.err (!%p2020_p7)
}
 0x3b3   :  { %1698 = dma.vmem_to_hbm [thread:$0]  %s1696_s8, 64, %s3067_s5, [#allocation4]  }
 0x3b4   :  { %2024 = dma.done.wait [#allocation4], 64  }
 0x3b5   :  { %2025 = vsyncadd [#allocation4], 4294967232 }
 0x3b6   :  { %1702 = vsyncpa [#allocation4], 1 }

</bundles_post_ra>
